<compile_context>
chip_gen: v5e
topology: v5e:2x2
jax: 0.10.0
libtpu: 0.0.40
codegen_flags: <defaults>
</compile_context>

<pallas_src>
import functools

import jax
import jax.numpy as jnp
from jax.experimental import pallas as pl
from jax.experimental.pallas import tpu as pltpu

DEGREES = (0, 1, 2, 3, 4, 5)          # as in the original `degrees`
NUM_ATOM_FEATURES = 32                # num_atom_features()
NUM_BOND_FEATURES = 8                 # num_bond_features()
NUM_HIDDEN_FEATURES = [32, 32]        # num_hidden_features
FP_LENGTH = 64                        # fp_length
NORMALIZE = True

PAD = 128                             # lane padding for every feature dimension
NUM_DEG = len(DEGREES)
VMEM = pltpu.MemorySpace.VMEM


def _vspec():
    # whole-array block resident in VMEM (everything here is tiny; no grid tiling needed)
    return pl.BlockSpec(memory_space=VMEM)


# ----------------------------- fused Pallas kernel -----------------------------

def _fused_convnet_kernel(
        h_ref, bond_ref, a_atom_ref, a_bond_ref, mol_ref, deg_mask_ref,
        w_hs_ref, b_hs_ref, w_deg_ref, b_deg_ref, w_out_last_ref, b_out_last_ref,
        fp_ref,
        *, num_layers, n_active, fp_length, normalize):
    num_atoms = h_ref.shape[0]

    h = h_ref[...]                                           # (atoms, 128), pad lanes are 0

    # Bond neighborhood sums are layer-invariant: one MXU matmul for all layers/degrees.
    summed_bond = jnp.dot(a_bond_ref[...], bond_ref[...],
                          preferred_element_type=jnp.float32)

    # hoisted once: lane-validity mask for the padded fingerprint lanes
    lane = jax.lax.broadcasted_iota(jnp.int32, (num_atoms, PAD), 1)
    fp_valid = lane < fp_length
    deg_mask = deg_mask_ref[...]                             # (atoms, n_active*128), lane-replicated

    def softmax_masked(logits):
        logits = jnp.where(fp_valid, logits, jnp.float32(-1e30))
        m = jnp.max(logits, axis=-1, keepdims=True)
        e = jnp.exp(logits - m)
        return e / jnp.sum(e, axis=-1, keepdims=True)        # exact division (tight accuracy)

    # Deferred fingerprint projection: accumulate per-atom softmax probabilities and
    # project through the molecule-membership matrix ONCE at the very end.
    p_acc = jnp.zeros((num_atoms, PAD), jnp.float32)

    for i in range(num_layers):
        # ONE matmul produces both the fingerprint logits and the self logits
        # (weights stacked along N host-side): (atoms,128) x (128,256).
        hs = jnp.dot(h, w_hs_ref[i], preferred_element_type=jnp.float32) + b_hs_ref[i]
        p_acc = p_acc + softmax_masked(hs[:, :PAD])
        self_logits = hs[:, PAD:2 * PAD]

        # neighbor-atom feature sums: adjacency matmul instead of gather + axis-1 reduce
        summed_atom = jnp.dot(a_atom_ref[...], h, preferred_element_type=jnp.float32)

        # ALL active per-degree linears fused into ONE matmul:
        # K = 256 ([atom || bond] inputs), N = n_active * 128 (degree slabs).
        nbr_in = jnp.concatenate([summed_atom, summed_bond], axis=-1)      # (atoms, 256)
        deg_all = (jnp.dot(nbr_in, w_deg_ref[i], preferred_element_type=jnp.float32)
                   + b_deg_ref[i])
        deg_all = deg_all * deg_mask                         # select each atom's own degree slab
        nbr_logits = deg_all[:, 0:PAD]
        for j in range(1, n_active):                         # aligned 128-lane slab sum (VPU)
            nbr_logits = nbr_logits + deg_all[:, j * PAD:(j + 1) * PAD]

        total = self_logits + nbr_logits
        if normalize:
            # F.normalize: x / max(||x||_2, eps); rsqrt(max(||x||^2, eps^2)) is identical
            sq = jnp.sum(total * total, axis=-1, keepdims=True)
            total = total * jax.lax.rsqrt(jnp.maximum(sq, 1e-24))
        h = jnp.maximum(total, 0.0)                          # ReLU

    # final fingerprint stage on the last hidden features
    logits = (jnp.dot(h, w_out_last_ref[...], preferred_element_type=jnp.float32)
              + b_out_last_ref[...])
    p_acc = p_acc + softmax_masked(logits)

    # single deferred molecule-membership matmul (sum_and_stack over all layers at once)
    fp_ref[...] = jnp.dot(mol_ref[...], p_acc, preferred_element_type=jnp.float32)


def neural_conv_forward(packed_params, packed_graph):
    (h0, bond, a_atom, a_bond, mol, deg_mask, active_degrees) = packed_graph
    (w_hs, b_hs, w_deg, b_deg, w_out_last, b_out_last) = packed_params
    num_mols = mol.shape[0]

    kernel = functools.partial(
        _fused_convnet_kernel,
        num_layers=len(NUM_HIDDEN_FEATURES),
        n_active=len(active_degrees),
        fp_length=FP_LENGTH,
        normalize=NORMALIZE)

    # TODO(synk): for realistic molecule counts the dense O(atoms^2) adjacency must be
    # grid-tiled over atom/molecule row blocks (weights resident via index_map -> block 0,
    # molecule axis marked "parallel") to stay inside v7x's 64 MiB VMEM and use both TCs.
    fp_pad = pl.pallas_call(
        kernel,
        out_shape=jax.ShapeDtypeStruct((num_mols, PAD), jnp.float32),
        in_specs=[_vspec()] * 12,
        out_specs=_vspec(),
    )(h0, bond, a_atom, a_bond, mol, deg_mask,
      w_hs, b_hs, w_deg, b_deg, w_out_last, b_out_last)
    return fp_pad[:, :FP_LENGTH]                             # drop lane padding


# ----------------------------- parameters -----------------------------

def _init_linear(key, in_size, out_size):
    kw, kb = jax.random.split(key)
    bound = 1.0 / jnp.sqrt(jnp.float32(in_size))
    w = jax.random.uniform(kw, (out_size, in_size), jnp.float32, -bound, bound)
    b = jax.random.uniform(kb, (out_size,), jnp.float32, -bound, bound)
    return w, b


def init_params(key):
    layers_config = [NUM_ATOM_FEATURES] + NUM_HIDDEN_FEATURES
    params = {"linears": [], "linear_degrees": [], "linear_outs": []}
    for in_size, out_size in zip(layers_config[:-1], layers_config[1:]):
        key, k = jax.random.split(key)
        params["linears"].append(_init_linear(k, in_size, out_size))
        deg_list = []
        for _ in DEGREES:
            key, k = jax.random.split(key)
            deg_list.append(_init_linear(k, in_size + NUM_BOND_FEATURES, out_size))
        params["linear_degrees"].append(deg_list)
    for layer_index in range(len(NUM_HIDDEN_FEATURES) + 1):
        key, k = jax.random.split(key)
        params["linear_outs"].append(_init_linear(k, layers_config[layer_index], FP_LENGTH))
    return params


def pack_params(params, active_degrees):
    """Transpose to (in, out), zero-pad to 128 lanes and fuse along K / N — done ONCE.

    w_hs[i]  : (128, 256)  = [ W_out_i.T | W_self_i.T ]           (shared input h)
    w_deg[i] : (256, n_active*128), rows 0:128 atom block, rows 128:256 bond block,
               one 128-lane slab of N per *active* degree (unused degrees dropped).
    """
    L = len(NUM_HIDDEN_FEATURES)
    n_active = len(active_degrees)
    w_hs = jnp.zeros((L, PAD, 2 * PAD), jnp.float32)
    b_hs = jnp.zeros((L, 1, 2 * PAD), jnp.float32)
    w_deg = jnp.zeros((L, 2 * PAD, n_active * PAD), jnp.float32)
    b_deg = jnp.zeros((L, 1, n_active * PAD), jnp.float32)

    for i in range(L):
        w_o, b_o = params["linear_outs"][i]               # (fp, in)
        fp_s, in_o = w_o.shape
        w_hs = w_hs.at[i, :in_o, :fp_s].set(w_o.T)
        b_hs = b_hs.at[i, 0, :fp_s].set(b_o)

        w_s, b_s = params["linears"][i]                   # (out, in)
        out_s, in_s = w_s.shape
        w_hs = w_hs.at[i, :in_s, PAD:PAD + out_s].set(w_s.T)
        b_hs = b_hs.at[i, 0, PAD:PAD + out_s].set(b_s)

        for j, d in enumerate(active_degrees):
            wd, bd = params["linear_degrees"][i][d]       # (out, in + bond)
            wd_a, wd_b = wd[:, :in_s], wd[:, in_s:]       # split atom / bond input blocks
            col = j * PAD
            w_deg = w_deg.at[i, :in_s, col:col + out_s].set(wd_a.T)
            w_deg = w_deg.at[i, PAD:PAD + wd_b.shape[1], col:col + out_s].set(wd_b.T)
            b_deg = b_deg.at[i, 0, col:col + out_s].set(bd)

    w_last, b_last = params["linear_outs"][L]             # (fp, in)
    fp_s, in_last = w_last.shape
    w_out_last = jnp.zeros((PAD, PAD), jnp.float32).at[:in_last, :fp_s].set(w_last.T)
    b_out_last = jnp.zeros((1, PAD), jnp.float32).at[0, :fp_s].set(b_last)
    return (w_hs, b_hs, w_deg, b_deg, w_out_last, b_out_last)


# ----------------------------- synthetic graph -----------------------------
# TODO(synk): real `array_rep_from_smiles` needs RDKit graph construction; replaced by a
# deterministic synthetic graph with atoms ordered by degree (as molgraph produces).

def make_graph(key):
    deg_counts = {1: 6, 2: 6, 3: 4}            # atoms 0-5 deg1, 6-11 deg2, 12-15 deg3
    num_atoms = sum(deg_counts.values())       # 16
    num_bonds = 24
    k1, k2, ka, kb = jax.random.split(key, 4)
    atom_features = jax.random.normal(k1, (num_atoms, NUM_ATOM_FEATURES), jnp.float32)
    bond_features = jax.random.normal(k2, (num_bonds, NUM_BOND_FEATURES), jnp.float32)
    atom_neighbors, bond_neighbors = {}, {}
    for d, n_d in deg_counts.items():
        ka, kai = jax.random.split(ka)
        kb, kbi = jax.random.split(kb)
        atom_neighbors[d] = jax.random.randint(kai, (n_d, d), 0, num_atoms)
        bond_neighbors[d] = jax.random.randint(kbi, (n_d, d), 0, num_bonds)
    atom_list = [list(range(0, 8)), list(range(8, 16))]          # 2 molecules
    return atom_features, bond_features, atom_neighbors, bond_neighbors, atom_list


def pack_graph(atom_features, bond_features, atom_neighbors, bond_neighbors, atom_list):
    """Pad features to 128 lanes and convert neighbor index lists into count-adjacency
    matrices, a lane-replicated per-degree atom mask and a molecule-membership matrix
    (host-side graph prep, the analogue of molgraph / array_rep_from_smiles)."""
    num_atoms, num_bonds = atom_features.shape[0], bond_features.shape[0]
    h0 = jnp.zeros((num_atoms, PAD), jnp.float32).at[:, :atom_features.shape[1]].set(atom_features)
    bond = jnp.zeros((num_bonds, PAD), jnp.float32).at[:, :bond_features.shape[1]].set(bond_features)

    active_degrees = tuple(
        d for d in DEGREES
        if d in atom_neighbors and atom_neighbors[d].shape[0] > 0)
    n_active = len(active_degrees)

    a_atom = jnp.zeros((num_atoms, num_atoms), jnp.float32)
    a_bond = jnp.zeros((num_atoms, num_bonds), jnp.float32)
    # deg_mask is pre-replicated across all 128 lanes of each active-degree slab
    deg_mask = jnp.zeros((num_atoms, n_active * PAD), jnp.float32)
    offset = 0
    for j, d in enumerate(active_degrees):     # atoms are contiguous, ordered by degree
        a_idx = atom_neighbors[d]
        b_idx = bond_neighbors[d]
        n_d = a_idx.shape[0]
        rows = jnp.broadcast_to((offset + jnp.arange(n_d))[:, None], a_idx.shape).reshape(-1)
        a_atom = a_atom.at[rows, a_idx.reshape(-1)].add(1.0)
        a_bond = a_bond.at[rows, b_idx.reshape(-1)].add(1.0)
        deg_mask = deg_mask.at[offset:offset + n_d, j * PAD:(j + 1) * PAD].set(1.0)
        offset += n_d

    num_mols = len(atom_list)
    mol = jnp.zeros((num_mols, num_atoms), jnp.float32)
    for m, idxs in enumerate(atom_list):
        mol = mol.at[m, jnp.asarray(idxs)].set(1.0)
    return (h0, bond, a_atom, a_bond, mol, deg_mask, active_degrees)


# ----------------------------- pure-JAX reference -----------------------------

def reference_forward(params, atom_features, bond_features,
                      atom_neighbors, bond_neighbors, atom_list):
    # pure-JAX mirror of the PyTorch forward for verification (HIGHEST matmul precision
    # so the comparison is not limited by the reference's default TPU matmul precision)
    def lin(x, wb):
        w, b = wb
        return jnp.dot(x, w.T, precision=jax.lax.Precision.HIGHEST) + b

    all_layer_fps = []
    num_layers = len(NUM_HIDDEN_FEATURES)

    def write_fp(x, li):
        out = jax.nn.softmax(lin(x, params["linear_outs"][li]), axis=-1)
        all_layer_fps.append(jnp.stack(
            [jnp.sum(out[jnp.asarray(idxs)], axis=0) for idxs in atom_list]))

    for i in range(num_layers):
        write_fp(atom_features, i)
        self_logits = lin(atom_features, params["linears"][i])
        nbr_logits = []
        for degree in DEGREES:
            if degree not in atom_neighbors or atom_neighbors[degree].shape[0] == 0:
                continue
            stacked = jnp.concatenate(
                [atom_features[atom_neighbors[degree]],
                 bond_features[bond_neighbors[degree]]], axis=2)
            summed = jnp.sum(stacked, axis=1)
            nbr_logits.append(lin(summed, params["linear_degrees"][i][degree]))
        neighbors_logits = jnp.concatenate(nbr_logits, axis=0)
        total = neighbors_logits + self_logits
        if NORMALIZE:
            total = total / jnp.maximum(
                jnp.linalg.norm(total, axis=-1, keepdims=True), 1e-12)
        atom_features = jnp.maximum(total, 0.0)
    write_fp(atom_features, num_layers)
    return jnp.sum(jnp.stack(all_layer_fps), axis=0)


# ----------------------------- main -----------------------------

if __name__ == "__main__":
    key = jax.random.PRNGKey(0)
    kp, kg = jax.random.split(key)
    params = init_params(kp)

    (atom_features, bond_features, atom_neighbors,
     bond_neighbors, atom_list) = make_graph(kg)
    packed_graph = pack_graph(atom_features, bond_features,
                              atom_neighbors, bond_neighbors, atom_list)
    active_degrees = packed_graph[-1]
    packed_params = pack_params(params, active_degrees)   # fuse/pad/stack weights ONCE

    out = neural_conv_forward(packed_params, packed_graph)
    out = jax.block_until_ready(out)

    ref = reference_forward(params, atom_features, bond_features,
                            atom_neighbors, bond_neighbors, atom_list)
    assert out.shape == (len(atom_list), FP_LENGTH), out.shape
    # exact softmax division (approx reciprocal removed) -> residual mismatch is only the
    # f32 MXU pass decomposition vs the HIGHEST-precision reference matmuls
    assert jnp.allclose(out, ref, atol=1e-4, rtol=1e-4), (
        "Pallas result mismatch vs reference: "
        f"max abs diff {jnp.max(jnp.abs(out - ref))}")
    print("KERNEL_OK")
</pallas_src>

<mosaic_0001>
module attributes {stable_mosaic.version = 11 : i64} {
  func.func @_fused_convnet_kernel(%arg0: memref<16x128xf32, #tpu.memory_space<vmem>>, %arg1: memref<24x128xf32, #tpu.memory_space<vmem>>, %arg2: memref<16x16xf32, #tpu.memory_space<vmem>>, %arg3: memref<16x24xf32, #tpu.memory_space<vmem>>, %arg4: memref<2x16xf32, #tpu.memory_space<vmem>>, %arg5: memref<16x384xf32, #tpu.memory_space<vmem>>, %arg6: memref<2x128x256xf32, #tpu.memory_space<vmem>>, %arg7: memref<2x1x256xf32, #tpu.memory_space<vmem>>, %arg8: memref<2x256x384xf32, #tpu.memory_space<vmem>>, %arg9: memref<2x1x384xf32, #tpu.memory_space<vmem>>, %arg10: memref<128x128xf32, #tpu.memory_space<vmem>>, %arg11: memref<1x128xf32, #tpu.memory_space<vmem>>, %arg12: memref<2x128xf32, #tpu.memory_space<vmem>>) attributes {dimension_semantics = [], scalar_prefetch = 0 : i64, scratch_operands = 0 : i64, tpu.core_type = #tpu.core_type<tc>} {
    %c0 = arith.constant 0 : index
    %c0_0 = arith.constant 0 : index
    %0 = vector.load %arg0[%c0, %c0_0] : memref<16x128xf32, #tpu.memory_space<vmem>>, vector<16x128xf32>
    %c0_1 = arith.constant 0 : index
    %c0_2 = arith.constant 0 : index
    %1 = vector.load %arg3[%c0_1, %c0_2] : memref<16x24xf32, #tpu.memory_space<vmem>>, vector<16x24xf32>
    %c0_3 = arith.constant 0 : index
    %c0_4 = arith.constant 0 : index
    %2 = vector.load %arg1[%c0_3, %c0_4] : memref<24x128xf32, #tpu.memory_space<vmem>>, vector<24x128xf32>
    %cst = arith.constant dense<0.000000e+00> : vector<16x128xf32>
    %3 = tpu.matmul %1, %2, %cst {dimension_numbers = #tpu.dot_dimension_numbers<[1], [0], [0], [1], [0, 0, 1, 1], [], []>} : vector<16x24xf32>, vector<24x128xf32>, vector<16x128xf32> -> vector<16x128xf32>
    %4 = tpu.iota {dimensions = array<i32: 1>} : vector<16x128xi32>
    %c64_i32 = arith.constant 64 : i32
    %5 = vector.broadcast %c64_i32 : i32 to vector<16x128xi32>
    %6 = arith.cmpi slt, %4, %5 : vector<16x128xi32>
    %c0_5 = arith.constant 0 : index
    %c0_6 = arith.constant 0 : index
    %7 = vector.load %arg5[%c0_5, %c0_6] : memref<16x384xf32, #tpu.memory_space<vmem>>, vector<16x384xf32>
    %cst_7 = arith.constant 0.000000e+00 : f32
    %8 = vector.broadcast %cst_7 : f32 to vector<16x128xf32>
    %c0_8 = arith.constant 0 : index
    %c0_9 = arith.constant 0 : index
    %c0_10 = arith.constant 0 : index
    %9 = vector.load %arg6[%c0_8, %c0_9, %c0_10] : memref<2x128x256xf32, #tpu.memory_space<vmem>>, vector<1x128x256xf32>
    %10 = vector.shape_cast %9 : vector<1x128x256xf32> to vector<128x256xf32>
    %cst_11 = arith.constant dense<0.000000e+00> : vector<16x256xf32>
    %11 = tpu.matmul %0, %10, %cst_11 {dimension_numbers = #tpu.dot_dimension_numbers<[1], [0], [0], [1], [0, 0, 1, 1], [], []>} : vector<16x128xf32>, vector<128x256xf32>, vector<16x256xf32> -> vector<16x256xf32>
    %c0_12 = arith.constant 0 : index
    %c0_13 = arith.constant 0 : index
    %c0_14 = arith.constant 0 : index
    %12 = vector.load %arg7[%c0_12, %c0_13, %c0_14] : memref<2x1x256xf32, #tpu.memory_space<vmem>>, vector<1x1x256xf32>
    %13 = vector.shape_cast %12 : vector<1x1x256xf32> to vector<1x256xf32>
    %14 = vector.broadcast %13 : vector<1x256xf32> to vector<16x256xf32>
    %15 = arith.addf %11, %14 : vector<16x256xf32>
    %16 = vector.extract_strided_slice %15 {offsets = [0, 0], sizes = [16, 128], strides = [1, 1]} : vector<16x256xf32> to vector<16x128xf32>
    %cst_15 = arith.constant -1.000000e+30 : f32
    %17 = vector.broadcast %cst_15 : f32 to vector<16x128xf32>
    %18 = arith.select %6, %16, %17 : vector<16x128xi1>, vector<16x128xf32>
    %cst_16 = arith.constant dense<0xFF800000> : vector<16xf32>
    %19 = vector.multi_reduction <maximumf>, %18, %cst_16 [1] : vector<16x128xf32> to vector<16xf32>
    %20 = vector.shape_cast %19 : vector<16xf32> to vector<16x1xf32>
    %21 = vector.broadcast %20 : vector<16x1xf32> to vector<16x128xf32>
    %22 = arith.subf %18, %21 : vector<16x128xf32>
    %23 = math.exp %22 : vector<16x128xf32>
    %cst_17 = arith.constant dense<0.000000e+00> : vector<16xf32>
    %24 = vector.multi_reduction <add>, %23, %cst_17 [1] : vector<16x128xf32> to vector<16xf32>
    %25 = vector.shape_cast %24 : vector<16xf32> to vector<16x1xf32>
    %26 = vector.broadcast %25 : vector<16x1xf32> to vector<16x128xf32>
    %27 = arith.divf %23, %26 : vector<16x128xf32>
    %28 = arith.addf %8, %27 : vector<16x128xf32>
    %29 = vector.extract_strided_slice %15 {offsets = [0, 128], sizes = [16, 128], strides = [1, 1]} : vector<16x256xf32> to vector<16x128xf32>
    %c0_18 = arith.constant 0 : index
    %c0_19 = arith.constant 0 : index
    %30 = vector.load %arg2[%c0_18, %c0_19] : memref<16x16xf32, #tpu.memory_space<vmem>>, vector<16x16xf32>
    %cst_20 = arith.constant dense<0.000000e+00> : vector<16x128xf32>
    %31 = tpu.matmul %30, %0, %cst_20 {dimension_numbers = #tpu.dot_dimension_numbers<[1], [0], [0], [1], [0, 0, 1, 1], [], []>} : vector<16x16xf32>, vector<16x128xf32>, vector<16x128xf32> -> vector<16x128xf32>
    %32 = tpu.concatenate %31, %3 in 1 : vector<16x128xf32>, vector<16x128xf32> -> vector<16x256xf32>
    %c0_21 = arith.constant 0 : index
    %c0_22 = arith.constant 0 : index
    %c0_23 = arith.constant 0 : index
    %33 = vector.load %arg8[%c0_21, %c0_22, %c0_23] : memref<2x256x384xf32, #tpu.memory_space<vmem>>, vector<1x256x384xf32>
    %34 = vector.shape_cast %33 : vector<1x256x384xf32> to vector<256x384xf32>
    %cst_24 = arith.constant dense<0.000000e+00> : vector<16x384xf32>
    %35 = tpu.matmul %32, %34, %cst_24 {dimension_numbers = #tpu.dot_dimension_numbers<[1], [0], [0], [1], [0, 0, 1, 1], [], []>} : vector<16x256xf32>, vector<256x384xf32>, vector<16x384xf32> -> vector<16x384xf32>
    %c0_25 = arith.constant 0 : index
    %c0_26 = arith.constant 0 : index
    %c0_27 = arith.constant 0 : index
    %36 = vector.load %arg9[%c0_25, %c0_26, %c0_27] : memref<2x1x384xf32, #tpu.memory_space<vmem>>, vector<1x1x384xf32>
    %37 = vector.shape_cast %36 : vector<1x1x384xf32> to vector<1x384xf32>
    %38 = vector.broadcast %37 : vector<1x384xf32> to vector<16x384xf32>
    %39 = arith.addf %35, %38 : vector<16x384xf32>
    %40 = arith.mulf %39, %7 : vector<16x384xf32>
    %41 = vector.extract_strided_slice %40 {offsets = [0, 0], sizes = [16, 128], strides = [1, 1]} : vector<16x384xf32> to vector<16x128xf32>
    %42 = vector.extract_strided_slice %40 {offsets = [0, 128], sizes = [16, 128], strides = [1, 1]} : vector<16x384xf32> to vector<16x128xf32>
    %43 = arith.addf %41, %42 : vector<16x128xf32>
    %44 = vector.extract_strided_slice %40 {offsets = [0, 256], sizes = [16, 128], strides = [1, 1]} : vector<16x384xf32> to vector<16x128xf32>
    %45 = arith.addf %43, %44 : vector<16x128xf32>
    %46 = arith.addf %29, %45 : vector<16x128xf32>
    %47 = arith.mulf %46, %46 : vector<16x128xf32>
    %cst_28 = arith.constant dense<0.000000e+00> : vector<16xf32>
    %48 = vector.multi_reduction <add>, %47, %cst_28 [1] : vector<16x128xf32> to vector<16xf32>
    %49 = vector.shape_cast %48 : vector<16xf32> to vector<16x1xf32>
    %cst_29 = arith.constant 1.000000e-24 : f32
    %50 = vector.broadcast %cst_29 : f32 to vector<16x1xf32>
    %51 = arith.maximumf %49, %50 : vector<16x1xf32>
    %52 = math.rsqrt %51 : vector<16x1xf32>
    %53 = vector.broadcast %52 : vector<16x1xf32> to vector<16x128xf32>
    %54 = arith.mulf %46, %53 : vector<16x128xf32>
    %cst_30 = arith.constant 0.000000e+00 : f32
    %55 = vector.broadcast %cst_30 : f32 to vector<16x128xf32>
    %56 = arith.maximumf %54, %55 : vector<16x128xf32>
    %c1 = arith.constant 1 : index
    %c0_31 = arith.constant 0 : index
    %c0_32 = arith.constant 0 : index
    %57 = vector.load %arg6[%c1, %c0_31, %c0_32] : memref<2x128x256xf32, #tpu.memory_space<vmem>>, vector<1x128x256xf32>
    %58 = vector.shape_cast %57 : vector<1x128x256xf32> to vector<128x256xf32>
    %cst_33 = arith.constant dense<0.000000e+00> : vector<16x256xf32>
    %59 = tpu.matmul %56, %58, %cst_33 {dimension_numbers = #tpu.dot_dimension_numbers<[1], [0], [0], [1], [0, 0, 1, 1], [], []>} : vector<16x128xf32>, vector<128x256xf32>, vector<16x256xf32> -> vector<16x256xf32>
    %c1_34 = arith.constant 1 : index
    %c0_35 = arith.constant 0 : index
    %c0_36 = arith.constant 0 : index
    %60 = vector.load %arg7[%c1_34, %c0_35, %c0_36] : memref<2x1x256xf32, #tpu.memory_space<vmem>>, vector<1x1x256xf32>
    %61 = vector.shape_cast %60 : vector<1x1x256xf32> to vector<1x256xf32>
    %62 = vector.broadcast %61 : vector<1x256xf32> to vector<16x256xf32>
    %63 = arith.addf %59, %62 : vector<16x256xf32>
    %64 = vector.extract_strided_slice %63 {offsets = [0, 0], sizes = [16, 128], strides = [1, 1]} : vector<16x256xf32> to vector<16x128xf32>
    %cst_37 = arith.constant -1.000000e+30 : f32
    %65 = vector.broadcast %cst_37 : f32 to vector<16x128xf32>
    %66 = arith.select %6, %64, %65 : vector<16x128xi1>, vector<16x128xf32>
    %cst_38 = arith.constant dense<0xFF800000> : vector<16xf32>
    %67 = vector.multi_reduction <maximumf>, %66, %cst_38 [1] : vector<16x128xf32> to vector<16xf32>
    %68 = vector.shape_cast %67 : vector<16xf32> to vector<16x1xf32>
    %69 = vector.broadcast %68 : vector<16x1xf32> to vector<16x128xf32>
    %70 = arith.subf %66, %69 : vector<16x128xf32>
    %71 = math.exp %70 : vector<16x128xf32>
    %cst_39 = arith.constant dense<0.000000e+00> : vector<16xf32>
    %72 = vector.multi_reduction <add>, %71, %cst_39 [1] : vector<16x128xf32> to vector<16xf32>
    %73 = vector.shape_cast %72 : vector<16xf32> to vector<16x1xf32>
    %74 = vector.broadcast %73 : vector<16x1xf32> to vector<16x128xf32>
    %75 = arith.divf %71, %74 : vector<16x128xf32>
    %76 = arith.addf %28, %75 : vector<16x128xf32>
    %77 = vector.extract_strided_slice %63 {offsets = [0, 128], sizes = [16, 128], strides = [1, 1]} : vector<16x256xf32> to vector<16x128xf32>
    %c0_40 = arith.constant 0 : index
    %c0_41 = arith.constant 0 : index
    %78 = vector.load %arg2[%c0_40, %c0_41] : memref<16x16xf32, #tpu.memory_space<vmem>>, vector<16x16xf32>
    %cst_42 = arith.constant dense<0.000000e+00> : vector<16x128xf32>
    %79 = tpu.matmul %78, %56, %cst_42 {dimension_numbers = #tpu.dot_dimension_numbers<[1], [0], [0], [1], [0, 0, 1, 1], [], []>} : vector<16x16xf32>, vector<16x128xf32>, vector<16x128xf32> -> vector<16x128xf32>
    %80 = tpu.concatenate %79, %3 in 1 : vector<16x128xf32>, vector<16x128xf32> -> vector<16x256xf32>
    %c1_43 = arith.constant 1 : index
    %c0_44 = arith.constant 0 : index
    %c0_45 = arith.constant 0 : index
    %81 = vector.load %arg8[%c1_43, %c0_44, %c0_45] : memref<2x256x384xf32, #tpu.memory_space<vmem>>, vector<1x256x384xf32>
    %82 = vector.shape_cast %81 : vector<1x256x384xf32> to vector<256x384xf32>
    %cst_46 = arith.constant dense<0.000000e+00> : vector<16x384xf32>
    %83 = tpu.matmul %80, %82, %cst_46 {dimension_numbers = #tpu.dot_dimension_numbers<[1], [0], [0], [1], [0, 0, 1, 1], [], []>} : vector<16x256xf32>, vector<256x384xf32>, vector<16x384xf32> -> vector<16x384xf32>
    %c1_47 = arith.constant 1 : index
    %c0_48 = arith.constant 0 : index
    %c0_49 = arith.constant 0 : index
    %84 = vector.load %arg9[%c1_47, %c0_48, %c0_49] : memref<2x1x384xf32, #tpu.memory_space<vmem>>, vector<1x1x384xf32>
    %85 = vector.shape_cast %84 : vector<1x1x384xf32> to vector<1x384xf32>
    %86 = vector.broadcast %85 : vector<1x384xf32> to vector<16x384xf32>
    %87 = arith.addf %83, %86 : vector<16x384xf32>
    %88 = arith.mulf %87, %7 : vector<16x384xf32>
    %89 = vector.extract_strided_slice %88 {offsets = [0, 0], sizes = [16, 128], strides = [1, 1]} : vector<16x384xf32> to vector<16x128xf32>
    %90 = vector.extract_strided_slice %88 {offsets = [0, 128], sizes = [16, 128], strides = [1, 1]} : vector<16x384xf32> to vector<16x128xf32>
    %91 = arith.addf %89, %90 : vector<16x128xf32>
    %92 = vector.extract_strided_slice %88 {offsets = [0, 256], sizes = [16, 128], strides = [1, 1]} : vector<16x384xf32> to vector<16x128xf32>
    %93 = arith.addf %91, %92 : vector<16x128xf32>
    %94 = arith.addf %77, %93 : vector<16x128xf32>
    %95 = arith.mulf %94, %94 : vector<16x128xf32>
    %cst_50 = arith.constant dense<0.000000e+00> : vector<16xf32>
    %96 = vector.multi_reduction <add>, %95, %cst_50 [1] : vector<16x128xf32> to vector<16xf32>
    %97 = vector.shape_cast %96 : vector<16xf32> to vector<16x1xf32>
    %cst_51 = arith.constant 1.000000e-24 : f32
    %98 = vector.broadcast %cst_51 : f32 to vector<16x1xf32>
    %99 = arith.maximumf %97, %98 : vector<16x1xf32>
    %100 = math.rsqrt %99 : vector<16x1xf32>
    %101 = vector.broadcast %100 : vector<16x1xf32> to vector<16x128xf32>
    %102 = arith.mulf %94, %101 : vector<16x128xf32>
    %cst_52 = arith.constant 0.000000e+00 : f32
    %103 = vector.broadcast %cst_52 : f32 to vector<16x128xf32>
    %104 = arith.maximumf %102, %103 : vector<16x128xf32>
    %c0_53 = arith.constant 0 : index
    %c0_54 = arith.constant 0 : index
    %105 = vector.load %arg10[%c0_53, %c0_54] : memref<128x128xf32, #tpu.memory_space<vmem>>, vector<128x128xf32>
    %cst_55 = arith.constant dense<0.000000e+00> : vector<16x128xf32>
    %106 = tpu.matmul %104, %105, %cst_55 {dimension_numbers = #tpu.dot_dimension_numbers<[1], [0], [0], [1], [0, 0, 1, 1], [], []>} : vector<16x128xf32>, vector<128x128xf32>, vector<16x128xf32> -> vector<16x128xf32>
    %c0_56 = arith.constant 0 : index
    %c0_57 = arith.constant 0 : index
    %107 = vector.load %arg11[%c0_56, %c0_57] : memref<1x128xf32, #tpu.memory_space<vmem>>, vector<1x128xf32>
    %108 = vector.broadcast %107 : vector<1x128xf32> to vector<16x128xf32>
    %109 = arith.addf %106, %108 : vector<16x128xf32>
    %cst_58 = arith.constant -1.000000e+30 : f32
    %110 = vector.broadcast %cst_58 : f32 to vector<16x128xf32>
    %111 = arith.select %6, %109, %110 : vector<16x128xi1>, vector<16x128xf32>
    %cst_59 = arith.constant dense<0xFF800000> : vector<16xf32>
    %112 = vector.multi_reduction <maximumf>, %111, %cst_59 [1] : vector<16x128xf32> to vector<16xf32>
    %113 = vector.shape_cast %112 : vector<16xf32> to vector<16x1xf32>
    %114 = vector.broadcast %113 : vector<16x1xf32> to vector<16x128xf32>
    %115 = arith.subf %111, %114 : vector<16x128xf32>
    %116 = math.exp %115 : vector<16x128xf32>
    %cst_60 = arith.constant dense<0.000000e+00> : vector<16xf32>
    %117 = vector.multi_reduction <add>, %116, %cst_60 [1] : vector<16x128xf32> to vector<16xf32>
    %118 = vector.shape_cast %117 : vector<16xf32> to vector<16x1xf32>
    %119 = vector.broadcast %118 : vector<16x1xf32> to vector<16x128xf32>
    %120 = arith.divf %116, %119 : vector<16x128xf32>
    %121 = arith.addf %76, %120 : vector<16x128xf32>
    %c0_61 = arith.constant 0 : index
    %c0_62 = arith.constant 0 : index
    %122 = vector.load %arg4[%c0_61, %c0_62] : memref<2x16xf32, #tpu.memory_space<vmem>>, vector<2x16xf32>
    %cst_63 = arith.constant dense<0.000000e+00> : vector<2x128xf32>
    %123 = tpu.matmul %122, %121, %cst_63 {dimension_numbers = #tpu.dot_dimension_numbers<[1], [0], [0], [1], [0, 0, 1, 1], [], []>} : vector<2x16xf32>, vector<16x128xf32>, vector<2x128xf32> -> vector<2x128xf32>
    %c0_64 = arith.constant 0 : index
    %c0_65 = arith.constant 0 : index
    %124 = vector.load %arg12[%c0_64, %c0_65] : memref<2x128xf32, #tpu.memory_space<vmem>>, vector<2x128xf32>
    tpu.vector_store %arg12[%c0_64, %c0_65], %123 {strides = array<i32>} : memref<2x128xf32, #tpu.memory_space<vmem>>, vector<2x128xf32>,
    return
  }
}

</mosaic_0001>

<bundles_post_ra>
// kernel: tpu_custom_call.1
= control target key start
LH: loop header
LB: loop body
LE: loop exit
PB: predicated region body
PF: predicated region fallthrough
CT: control target
= control target key end

     0   :  { %17 = vsyncpa [#allocation3], 0  ;;  %s1922_s0 = inlined_call_operand.hbm [shape: f32[16,128], index: 0, kind: input, shape index: {}]   ;;  %s1923_s1 = inlined_call_operand.hbm [shape: f32[24,128], index: 1, kind: input, shape index: {}]   ;;  %s1924_s2 = inlined_call_operand.hbm [shape: f32[16,16], index: 2, kind: input, shape index: {}]   ;;  %s1925_s3 = inlined_call_operand.hbm [shape: f32[16,24], index: 3, kind: input, shape index: {}]   ;;  %s1926_s4 = inlined_call_operand.vmem [shape: f32[2,16], index: 4, kind: input, shape index: {}]   ;;  %s1927_s5 = inlined_call_operand.hbm [shape: f32[16,384], index: 5, kind: input, shape index: {}]   ;;  %s1928_s6 = inlined_call_operand.hbm [shape: f32[2,128,256], index: 6, kind: input, shape index: {}]   ;;  %s1929_s7 = inlined_call_operand.hbm [shape: f32[2,1,256], index: 7, kind: input, shape index: {}]   ;;  %s1930_s8 = inlined_call_operand.hbm [shape: f32[2,256,384], index: 8, kind: input, shape index: {}]   ;;  %s1931_s9 = inlined_call_operand.vmem [shape: f32[2,1,384], index: 9, kind: input, shape index: {}]   ;;  %s1932_s10 = inlined_call_operand.hbm [shape: f32[128,128], index: 10, kind: input, shape index: {}]   ;;  %s1933_s11 = inlined_call_operand.vmem [shape: f32[1,128], index: 11, kind: input, shape index: {}]   ;;  %s1934_s12 = inlined_call_operand.hbm [shape: f32[2,128], index: 12, kind: output, shape index: {}]  }
   0x1   :  { %18 = vsyncpa [#allocation6], 0 }
   0x2   :  { %19 = vsyncpa [#allocation9], 0 }
   0x3   :  { %20 = vsyncpa [#allocation12], 0 }
   0x4   :  { %21 = vsyncpa [#allocation15], 0 }
   0x5   :  { %22 = vsyncpa [#allocation4], 0  ;;  %s40_s23 = sshll.u32 %s1923_s1, 4  ;;  %s1587_s24 = smov [#allocation5]   ;;  %s41_s23 = int_to_ptr.hbm [resolvable:$true] %s40_s23 }
   0x6   :  { %s42_s25 = sshll.u32 %s1587_s24, 4  ;;  %s66_s28 = sshll.u32 %s1925_s3, 4  ;;  %s43_s25 = int_to_ptr.vmem [resolvable:$true] %s42_s25  ;;  %s67_s28 = int_to_ptr.hbm [resolvable:$true] %s66_s28 }
   0x7   :  { %s1588_s29 = smov 128   ;;  %s1589_s30 = smov 8  }
   0x8   :  { %48 = dma.hbm_to_vmem [thread:$0]  %s41_s23, 384, %s43_s25, [#allocation6], %s1588_s29, %s1588_s29, %s1589_s30  }
   0x9   :  { %s1590_s13 = smov [#allocation8]   ;;  %s94_s1 = sshll.u32 %s1928_s6, 4  ;;  %s95_s1 = int_to_ptr.hbm [resolvable:$true] %s94_s1 }
   0xa   :  { %s68_s14 = sshll.u32 %s1590_s13, 4  ;;  %s1591_s3 = smov [#allocation11]   ;;  %s69_s14 = int_to_ptr.vmem [resolvable:$true] %s68_s14 }
   0xb   :  { %74 = dma.hbm_to_vmem [thread:$0]  %s67_s28, 256, %s69_s14, [#allocation9], %s1588_s29, %s1588_s29, %s1589_s30  }
   0xc   :  { %s96_s17 = sshll.u32 %s1591_s3, 4  ;;  %s1592_s18 = smov 256   ;;  %s97_s17 = int_to_ptr.vmem [resolvable:$true] %s96_s17 }
   0xd   :  { %s1593_s19 = smov 16   ;;  %s120_s22 = sshll.u32 %s1930_s8, 4  ;;  %s121_s22 = int_to_ptr.hbm [resolvable:$true] %s120_s22 }
   0xe   :  { %102 = dma.hbm_to_vmem [thread:$0]  %s95_s1, 8192, %s97_s17, [#allocation12], %s1592_s18, %s1592_s18, %s1593_s19  }
   0xf   :  { %s1594_s23 = smov [#allocation14]   ;;  %s27_s26 = sshll.u32 %s1922_s0, 4  ;;  %s28_s26 = int_to_ptr.hbm [resolvable:$true] %s27_s26 }
  0x10   :  { %s122_s24 = sshll.u32 %s1594_s23, 4  ;;  %s1595_s27 = smov 384   ;;  %s123_s24 = int_to_ptr.vmem [resolvable:$true] %s122_s24 }
  0x11   :  { %s1596_s28 = smov 24   ;;  %s53_s15 = sshll.u32 %s1924_s2, 4  ;;  %s54_s15 = int_to_ptr.hbm [resolvable:$true] %s53_s15 }
  0x12   :  { %128 = dma.hbm_to_vmem [thread:$0]  %s121_s22, 24576, %s123_s24, [#allocation15], %s1595_s27, %s1595_s27, %s1596_s28  }
  0x13   :  { %s1597_s16 = smov [#allocation2]   ;;  %s1598_s8 = smov [#allocation7]  }
  0x14   :  { %s29_s1 = sshll.u32 %s1597_s16, 4  ;;  %s55_s3 = sshll.u32 %s1598_s8, 4  ;;  %s30_s1 = int_to_ptr.vmem [resolvable:$true] %s29_s1  ;;  %s56_s3 = int_to_ptr.vmem [resolvable:$true] %s55_s3 }
  0x15   :  { %35 = dma.hbm_to_vmem [thread:$0]  %s28_s26, 256, %s30_s1, [#allocation3], %s1588_s29, %s1588_s29, %s1589_s30  }
  0x16   :  { %s81_s18 = sshll.u32 %s1927_s5, 4  ;;  %s107_s20 = sshll.u32 %s1929_s7, 4  ;;  %s82_s18 = int_to_ptr.hbm [resolvable:$true] %s81_s18  ;;  %s108_s20 = int_to_ptr.hbm [resolvable:$true] %s107_s20 }
  0x17   :  { %61 = dma.hbm_to_vmem [thread:$0]  %s54_s15, 256, %s56_s3, [#allocation6], %s1588_s29, %s1588_s29, %s1589_s30  }
  0x18   :  { %s1599_s21 = smov [#allocation10]   ;;  %s1600_s23 = smov [#allocation13]  }
  0x19   :  { %s83_s22 = sshll.u32 %s1599_s21, 4  ;;  %s109_s24 = sshll.u32 %s1600_s23, 4  ;;  %s84_s22 = int_to_ptr.vmem [resolvable:$true] %s83_s22  ;;  %s110_s24 = int_to_ptr.vmem [resolvable:$true] %s109_s24 }
  0x1a   :  { %89 = dma.hbm_to_vmem [thread:$0]  %s82_s18, 768, %s84_s22, [#allocation9], %s1595_s27, %s1595_s27, %s1596_s28  }
  0x1b   :  { %s1601_s6 = smov 32   ;;  %s1602_s5 = smov 2  }
  0x1c   :  { %115 = dma.hbm_to_vmem [thread:$0]  %s108_s20, 64, %s110_s24, [#allocation12], %s1601_s6, %s1601_s6, %s1602_s5  }
  0x1d   :  { %s135_s13 = sshll.u32 %s1932_s10, 4  ;;  %s1603_s14 = smov [#allocation16]   ;;  %s136_s13 = int_to_ptr.hbm [resolvable:$true] %s135_s13 }
  0x1e   :  { %s137_s15 = sshll.u32 %s1603_s14, 4  ;;  %s138_s15 = int_to_ptr.vmem [resolvable:$true] %s137_s15 }
  0x1f   :  { %143 = dma.hbm_to_vmem [thread:$0]  %s136_s13, 2048, %s138_s15, [#allocation15], %s1588_s29, %s1588_s29, %s1589_s30  }
  0x20   :  { %1575 = dma.done.wait [#allocation3], 256  }
  0x21   :  { %1576 = vsyncadd [#allocation3], 4294967040 }
  0x22   :  { %1577 = dma.done.wait [#allocation6], 640  }
  0x23   :  { %1578 = vsyncadd [#allocation6], 4294966656 }
  0x24   :  { %1579 = dma.done.wait [#allocation9], 1024  }
  0x25   :  { %1580 = vsyncadd [#allocation9], 4294966272 }
  0x26   :  { %1581 = dma.done.wait [#allocation12], 8256  }
  0x27   :  { %1582 = vsyncadd [#allocation12], 4294959040 }
  0x28   :  { %1583 = dma.done.wait [#allocation15], 26624  }
  0x29   :  { %1584 = vsyncadd [#allocation15], 4294940672  ;;  %v188_v0 = vld [vmem:[#allocation5 + $0x10] sm:$0xff]  ;;  %v258_v1 = vld [vmem:[#allocation11 + $0xf0] sm:$0xff]  ;;  %vm362_vm0 = vcmask 130048   ;;  %vm189_vm1 = vcmask 195584  }
  0x2a   :  { %v1712_v2 = vld [vmem:[#allocation2 + $0x8] sm:$0xff]  ;;  %209 = vmatpush.msra.mxu2 %v188_v0  ;;  %266 = vmatpush.msra.mxu1 %v258_v1  ;;  %v187_v3 = vld [vmem:[#allocation5 + $0x8] sm:$0xff]  ;;  %v1714_v5 = vld [vmem:[#allocation2] sm:$0xff]  ;;  %s1604_s16 = smov [#allocation17]   ;;  %s1246_s0 = sshll.u32 %s1934_s12, 4  ;;  %s1247_s0 = int_to_ptr.hbm [resolvable:$true] %s1246_s0 }
  0x2b   :  { %v256_v4 = vld [vmem:[#allocation11 + $0xe0] sm:$0xff]  ;;  %383 = vmatpush.msra.mxu3 %v1712_v2  ;;  %v1717_v6 = vld [vmem:[#allocation7] sm:$0xff]  ;;  %v186_v7 = vld [vmem:[#allocation5] sm:$0xff]  ;;  %s1244_s1 = sshll.u32 %s1604_s16, 4  ;;  %s1245_s1 = int_to_ptr.vmem [resolvable:$true] %s1244_s1 }
  0x2c   :  { %210 = vmatpush.msra.mxu2 %v187_v3  ;;  %267 = vmatpush.msra.mxu1 %v256_v4  ;;  %v254_v8 = vld [vmem:[#allocation11 + $0xd0] sm:$0xff]  ;;  %v184_v9 = vld [vmem:[#allocation8] sm:$0xff]  ;;  %v259_v13 = vld [vmem:[#allocation11 + $0xf8] sm:$0xff] }
  0x2d   :  { %384 = vmatpush.msra.mxu3 %v1714_v5  ;;  %v252_v10 = vld [vmem:[#allocation11 + $0xc0] sm:$0xff]  ;;  %v250_v11 = vld [vmem:[#allocation11 + $0xb0] sm:$0xff]  ;;  %v257_v14 = vld [vmem:[#allocation11 + $0xe8] sm:$0xff] }
  0x2e   :  { %1262 = vmatmul.msk.f32.vlgmr.msra.gmra.mxu3 %vm362_vm0, %v1717_v6  ;;  %211 = vmatpush.msra.mxu2 %v186_v7  ;;  %v248_v12 = vld [vmem:[#allocation11 + $0xa0] sm:$0xff]  ;;  %v1723_v15 = vld [vmem:[#allocation7 + $0x8] sm:$0xff]  ;;  %v246_v16 = vld [vmem:[#allocation11 + $0x90] sm:$0xff] }
  0x2f   :  { %268 = vmatpush.msra.mxu1 %v254_v8  ;;  %1260 = vmatmul.msk.f32.vlgmr.msra.gmra.mxu2 %vm189_vm1, %v184_v9  ;;  %v185_v17 = vld [vmem:[#allocation8 + $0x8] sm:$0xff]  ;;  %v255_v18 = vld [vmem:[#allocation11 + $0xd8] sm:$0xff]  ;;  %v244_v21 = vld [vmem:[#allocation11 + $0x80] sm:$0xff] }
  0x30   :  { %289 = vmatpush.msrb.mxu2 %v259_v13  ;;  %v437_v19 = vld [vmem:[#allocation14 + $0x168] sm:$0xff]  ;;  %v482_v22 = vld [vmem:[#allocation14 + $0x2d0] sm:$0xff]  ;;  %v479_v26 = vld [vmem:[#allocation14 + $0x2b8] sm:$0xff] }
  0x31   :  { %269 = vmatpush.msra.mxu1 %v252_v10  ;;  %v485_v20 = vld [vmem:[#allocation14 + $0x2e8] sm:$0xff]  ;;  %v434_v24 = vld [vmem:[#allocation14 + $0x150] sm:$0xff]  ;;  %496 = vmatpush.msrb.mxu3 %v437_v19  ;;  %v431_v28 = vld [vmem:[#allocation14 + $0x138] sm:$0xff] }
  0x32   :  { %290 = vmatpush.msrb.mxu2 %v257_v14  ;;  %519 = vmatpush.msra.mxu0 %v485_v20  ;;  %v253_v23 = vld [vmem:[#allocation11 + $0xc8] sm:$0xff]  ;;  %v242_v25 = vld [vmem:[#allocation11 + $0x70] sm:$0xff]  ;;  %v251_v27 = vld [vmem:[#allocation11 + $0xb8] sm:$0xff] }
  0x33   :  { %270 = vmatpush.msra.mxu1 %v250_v11  ;;  %v240_v29 = vld [vmem:[#allocation11 + $0x60] sm:$0xff]  ;;  %497 = vmatpush.msrb.mxu3 %v434_v24  ;;  %v249_v31 = vld [vmem:[#allocation11 + $0xa8] sm:$0xff]  ;;  %v238_v33 = vld [vmem:[#allocation11 + $0x50] sm:$0xff] }
  0x34   :  { %291 = vmatpush.msrb.mxu2 %v255_v18  ;;  %520 = vmatpush.msra.mxu0 %v482_v22  ;;  %v476_v30 = vld [vmem:[#allocation14 + $0x2a0] sm:$0xff]  ;;  %v473_v34 = vld [vmem:[#allocation14 + $0x288] sm:$0xff]  ;;  %v247_v35 = vld [vmem:[#allocation11 + $0x98] sm:$0xff] }
  0x35   :  { %271 = vmatpush.msra.mxu1 %v248_v12  ;;  %v428_v32 = vld [vmem:[#allocation14 + $0x120] sm:$0xff]  ;;  %498 = vmatpush.msrb.mxu3 %v431_v28  ;;  %v425_v36 = vld [vmem:[#allocation14 + $0x108] sm:$0xff]  ;;  %v470_v38 = vld [vmem:[#allocation14 + $0x270] sm:$0xff] }
  0x36   :  { %1263 = vmatmul.msk.f32.gmra.mxu3 %vm362_vm0, %v1723_v15  ;;  %292 = vmatpush.msrb.mxu2 %v253_v23  ;;  %v236_v37 = vld [vmem:[#allocation11 + $0x40] sm:$0xff]  ;;  %v245_v39 = vld [vmem:[#allocation11 + $0x88] sm:$0xff]  ;;  %v422_v40 = vld [vmem:[#allocation14 + $0xf0] sm:$0xff] }
  0x37   :  { %272 = vmatpush.msra.mxu1 %v246_v16  ;;  %1261 = vmatmul.msk.f32.gmra.mxu2 %vm189_vm1, %v185_v17  ;;  %v234_v41 = vld [vmem:[#allocation11 + $0x30] sm:$0xff]  ;;  %v467_v42 = vld [vmem:[#allocation14 + $0x258] sm:$0xff]  ;;  %v464_v46 = vld [vmem:[#allocation14 + $0x240] sm:$0xff] }
  0x38   :  { %521 = vmatpush.msra.mxu0 %v479_v26  ;;  %293 = vmatpush.msrb.mxu2 %v251_v27  ;;  %v243_v43 = vld [vmem:[#allocation11 + $0x78] sm:$0xff]  ;;  %v232_v45 = vld [vmem:[#allocation11 + $0x20] sm:$0xff]  ;;  %v241_v47 = vld [vmem:[#allocation11 + $0x68] sm:$0xff] }
  0x39   :  { %273 = vmatpush.msra.mxu1 %v244_v21  ;;  %499 = vmatpush.msrb.mxu3 %v428_v32  ;;  %v419_v44 = vld [vmem:[#allocation14 + $0xd8] sm:$0xff]  ;;  %v416_v48 = vld [vmem:[#allocation14 + $0xc0] sm:$0xff]  ;;  %v230_v49 = vld [vmem:[#allocation11 + $0x10] sm:$0xff] }
  0x3a   :  { %522 = vmatpush.msra.mxu0 %v476_v30  ;;  %294 = vmatpush.msrb.mxu2 %v249_v31  ;;  %v461_v50 = vld [vmem:[#allocation14 + $0x228] sm:$0xff]  ;;  %v239_v51 = vld [vmem:[#allocation11 + $0x58] sm:$0xff]  ;;  %v228_v53 = vld [vmem:[#allocation11] sm:$0xff] }
  0x3b   :  { %274 = vmatpush.msra.mxu1 %v242_v25  ;;  %500 = vmatpush.msrb.mxu3 %v425_v36  ;;  %v413_v52 = vld [vmem:[#allocation14 + $0xa8] sm:$0xff]  ;;  %v458_v54 = vld [vmem:[#allocation14 + $0x210] sm:$0xff]  ;;  %v455_v59 = vld [vmem:[#allocation14 + $0x1f8] sm:$0xff] }
  0x3c   :  { %523 = vmatpush.msra.mxu0 %v473_v34  ;;  %295 = vmatpush.msrb.mxu2 %v247_v35  ;;  %v237_v55 = vld [vmem:[#allocation11 + $0x48] sm:$0xff]  ;;  %v438_v56 = vld [vmem:[#allocation14 + $0x170] sm:$0xff]  ;;  %v435_v60 = vld [vmem:[#allocation14 + $0x158] sm:$0xff] }
  0x3d   :  { %275 = vmatpush.msra.mxu1 %v240_v29  ;;  %501 = vmatpush.msrb.mxu3 %v422_v40  ;;  %v410_v57 = vld [vmem:[#allocation14 + $0x90] sm:$0xff]  ;;  %v407_v61 = vld [vmem:[#allocation14 + $0x78] sm:$0xff]  ;;  %v233_v62 = vld [vmem:[#allocation11 + $0x28] sm:$0xff] }
  0x3e   :  { %524 = vmatpush.msra.mxu0 %v470_v38  ;;  %296 = vmatpush.msrb.mxu2 %v245_v39  ;;  %v235_v58 = vld [vmem:[#allocation11 + $0x38] sm:$0xff]  ;;  %v452_v63 = vld [vmem:[#allocation14 + $0x1e0] sm:$0xff]  ;;  %v449_v4 = vld [vmem:[#allocation14 + $0x1c8] sm:$0xff] }
  0x3f   :  { %276 = vmatpush.msra.mxu1 %v238_v33  ;;  %502 = vmatpush.msrb.mxu3 %v419_v44  ;;  %v432_v0 = vld [vmem:[#allocation14 + $0x140] sm:$0xff]  ;;  %v231_v3 = vld [vmem:[#allocation11 + $0x18] sm:$0xff]  ;;  %v429_v7 = vld [vmem:[#allocation14 + $0x128] sm:$0xff] }
  0x40   :  { %525 = vmatpush.msra.mxu0 %v467_v42  ;;  %297 = vmatpush.msrb.mxu2 %v243_v43  ;;  %v404_v1 = vld [vmem:[#allocation14 + $0x60] sm:$0xff]  ;;  %v401_v8 = vld [vmem:[#allocation14 + $0x48] sm:$0xff]  ;;  %v486_v10 = vld [vmem:[#allocation14 + $0x2f0] sm:$0xff] }
  0x41   :  { %277 = vmatpush.msra.mxu1 %v236_v37  ;;  %503 = vmatpush.msrb.mxu3 %v416_v48  ;;  %v229_v9 = vld [vmem:[#allocation11 + $0x8] sm:$0xff]  ;;  %v426_v11 = vld [vmem:[#allocation14 + $0x110] sm:$0xff]  ;;  %v483_v14 = vld [vmem:[#allocation14 + $0x2d8] sm:$0xff] }
  0x42   :  { %526 = vmatpush.msra.mxu0 %v464_v46  ;;  %298 = vmatpush.msrb.mxu2 %v241_v47  ;;  %v398_v12 = vld [vmem:[#allocation14 + $0x30] sm:$0xff]  ;;  %v423_v16 = vld [vmem:[#allocation14 + $0xf8] sm:$0xff]  ;;  %v480_v19 = vld [vmem:[#allocation14 + $0x2c0] sm:$0xff] }
  0x43   :  { %278 = vmatpush.msra.mxu1 %v234_v41  ;;  %504 = vmatpush.msrb.mxu3 %v413_v52  ;;  %v446_v13 = vld [vmem:[#allocation14 + $0x1b0] sm:$0xff]  ;;  %v395_v17 = vld [vmem:[#allocation14 + $0x18] sm:$0xff]  ;;  %v420_v20 = vld [vmem:[#allocation14 + $0xe0] sm:$0xff] }
  0x44   :  { %527 = vmatpush.msra.mxu0 %v461_v50  ;;  %299 = vmatpush.msrb.mxu2 %v239_v51  ;;  %v443_v18 = vld [vmem:[#allocation14 + $0x198] sm:$0xff]  ;;  %v392_v21 = vld [vmem:[#allocation14] sm:$0xff]  ;;  %v477_v22 = vld [vmem:[#allocation14 + $0x2a8] sm:$0xff] }
  0x45   :  { %279 = vmatpush.msra.mxu1 %v232_v45  ;;  %505 = vmatpush.msrb.mxu3 %v410_v57  ;;  %v417_v23 = vld [vmem:[#allocation14 + $0xc8] sm:$0xff]  ;;  %v439_v24 = vld [vmem:[#allocation14 + $0x178] sm:$0xff]  ;;  %v440_v25 = vld [vmem:[#allocation14 + $0x180] sm:$0xff] }
  0x46   :  { %528 = vmatpush.msra.mxu0 %v458_v54  ;;  %300 = vmatpush.msrb.mxu2 %v237_v55  ;;  %v474_v26 = vld [vmem:[#allocation14 + $0x290] sm:$0xff]  ;;  %v436_v28 = vld [vmem:[#allocation14 + $0x160] sm:$0xff]  ;;  %v487_v29 = vld [vmem:[#allocation14 + $0x2f8] sm:$0xff] }
  0x47   :  { %280 = vmatpush.msra.mxu1 %v230_v49  ;;  %506 = vmatpush.msrb.mxu3 %v407_v61  ;;  %v414_v27 = vld [vmem:[#allocation14 + $0xb0] sm:$0xff]  ;;  %v471_v30 = vld [vmem:[#allocation14 + $0x278] sm:$0xff]  ;;  %v433_v32 = vld [vmem:[#allocation14 + $0x148] sm:$0xff] }
  0x48   :  { %301 = vmatpush.msrb.mxu2 %v235_v58  ;;  %529 = vmatpush.msra.mxu0 %v455_v59  ;;  %v411_v31 = vld [vmem:[#allocation14 + $0x98] sm:$0xff]  ;;  %v484_v33 = vld [vmem:[#allocation14 + $0x2e0] sm:$0xff]  ;;  %v430_v36 = vld [vmem:[#allocation14 + $0x130] sm:$0xff] }
  0x49   :  { %281 = vmatpush.msra.mxu1 %v228_v53  ;;  %507 = vmatpush.msrb.mxu3 %v404_v1  ;;  %v468_v34 = vld [vmem:[#allocation14 + $0x260] sm:$0xff]  ;;  %v465_v37 = vld [vmem:[#allocation14 + $0x248] sm:$0xff]  ;;  %v427_v39 = vld [vmem:[#allocation14 + $0x118] sm:$0xff] }
  0x4a   :  { %282 = vmatmul.f32.vlgmr.msra.gmra.mxu1 %v1714_v5  ;;  %302 = vmatpush.msrb.mxu2 %v233_v62  ;;  %v408_v35 = vld [vmem:[#allocation14 + $0x80] sm:$0xff]  ;;  %v405_v38 = vld [vmem:[#allocation14 + $0x68] sm:$0xff]  ;;  %v478_v40 = vld [vmem:[#allocation14 + $0x2b0] sm:$0xff] }
  0x4b   :  { %542 = vmatpush.msrb.mxu1 %v438_v56  ;;  %530 = vmatpush.msra.mxu0 %v452_v63  ;;  %v462_v41 = vld [vmem:[#allocation14 + $0x230] sm:$0xff]  ;;  %v424_v43 = vld [vmem:[#allocation14 + $0x100] sm:$0xff]  ;;  %v459_v44 = vld [vmem:[#allocation14 + $0x218] sm:$0xff] }
  0x4c   :  { %303 = vmatpush.msrb.mxu2 %v231_v3  ;;  %508 = vmatpush.msrb.mxu3 %v401_v8  ;;  %v402_v42 = vld [vmem:[#allocation14 + $0x50] sm:$0xff]  ;;  %v399_v45 = vld [vmem:[#allocation14 + $0x38] sm:$0xff]  ;;  %v421_v47 = vld [vmem:[#allocation14 + $0xe8] sm:$0xff] }
  0x4d   :  { %543 = vmatpush.msrb.mxu1 %v435_v60  ;;  %531 = vmatpush.msra.mxu0 %v449_v4  ;;  %v475_v46 = vld [vmem:[#allocation14 + $0x298] sm:$0xff]  ;;  %v456_v48 = vld [vmem:[#allocation14 + $0x200] sm:$0xff]  ;;  %v453_v51 = vld [vmem:[#allocation14 + $0x1e8] sm:$0xff] }
  0x4e   :  { %304 = vmatpush.msrb.mxu2 %v229_v9  ;;  %509 = vmatpush.msrb.mxu3 %v398_v12  ;;  %v396_v49 = vld [vmem:[#allocation14 + $0x20] sm:$0xff]  ;;  %v450_v52 = vld [vmem:[#allocation14 + $0x1d0] sm:$0xff]  ;;  %v447_v53 = vld [vmem:[#allocation14 + $0x1b8] sm:$0xff] }
  0x4f   :  { %544 = vmatpush.msrb.mxu1 %v432_v0  ;;  %532 = vmatpush.msra.mxu0 %v446_v13  ;;  %v472_v50 = vld [vmem:[#allocation14 + $0x280] sm:$0xff]  ;;  %v393_v54 = vld [vmem:[#allocation14 + $0x8] sm:$0xff]  ;;  %v418_v56 = vld [vmem:[#allocation14 + $0xd0] sm:$0xff] }
  0x50   :  { %565 = vmatpush.msra.mxu2 %v486_v10  ;;  %510 = vmatpush.msrb.mxu3 %v395_v17  ;;  %v444_v55 = vld [vmem:[#allocation14 + $0x1a0] sm:$0xff]  ;;  %v441_v57 = vld [vmem:[#allocation14 + $0x188] sm:$0xff]  ;;  %v415_v58 = vld [vmem:[#allocation14 + $0xb8] sm:$0xff] }
  0x51   :  { %545 = vmatpush.msrb.mxu1 %v429_v7  ;;  %533 = vmatpush.msra.mxu0 %v443_v18  ;;  %v466_v59 = vld [vmem:[#allocation14 + $0x250] sm:$0xff]  ;;  %v412_v60 = vld [vmem:[#allocation14 + $0xa0] sm:$0xff]  ;;  %v463_v61 = vld [vmem:[#allocation14 + $0x238] sm:$0xff] }
  0x52   :  { %285 = vmatmul.f32.gmra.mxu1 %v1712_v2  ;;  %566 = vmatpush.msra.mxu2 %v483_v14  ;;  %v409_v62 = vld [vmem:[#allocation14 + $0x88] sm:$0xff]  ;;  %v460_v63 = vld [vmem:[#allocation14 + $0x220] sm:$0xff]  ;;  %v406_v0 = vld [vmem:[#allocation14 + $0x70] sm:$0xff] }
  0x53   :  { %546 = vmatpush.msrb.mxu1 %v426_v11  ;;  %511 = vmatpush.msrb.mxu3 %v392_v21  ;;  %v457_v1 = vld [vmem:[#allocation14 + $0x208] sm:$0xff]  ;;  %v403_v3 = vld [vmem:[#allocation14 + $0x58] sm:$0xff]  ;;  %v454_v4 = vld [vmem:[#allocation14 + $0x1f0] sm:$0xff] }
  0x54   :  { %567 = vmatpush.msra.mxu2 %v480_v19  ;;  %534 = vmatpush.msra.mxu0 %v440_v25  ;;  %v400_v7 = vld [vmem:[#allocation14 + $0x40] sm:$0xff]  ;;  %v451_v8 = vld [vmem:[#allocation14 + $0x1d8] sm:$0xff]  ;;  %v397_v9 = vld [vmem:[#allocation14 + $0x28] sm:$0xff] }
  0x55   :  { %547 = vmatpush.msrb.mxu1 %v423_v16  ;;  %305 = vmatmul.f32.vlgmr.msrb.gmra.mxu2 %v1714_v5  ;;  %v481_v5 = vld [vmem:[#allocation14 + $0x2c8] sm:$0xff]  ;;  %v448_v10 = vld [vmem:[#allocation14 + $0x1c0] sm:$0xff]  ;;  %v394_v11 = vld [vmem:[#allocation14 + $0x10] sm:$0xff] }
  0x56   :  { %568 = vmatpush.msra.mxu2 %v477_v22  ;;  %588 = vmatpush.msra.mxu3 %v439_v24  ;;  %v445_v12 = vld [vmem:[#allocation14 + $0x1a8] sm:$0xff]  ;;  %v442_v13 = vld [vmem:[#allocation14 + $0x190] sm:$0xff]  ;;  %v1741_v19 = vld [vmem:[#allocation13] sm:$0x3]  ;;  %v219_v22 = vlaneseq }
  0x57   :  { %548 = vmatpush.msrb.mxu1 %v420_v20  ;;  %611 = vmatpush.msrb.mxu0 %v487_v29  ;;  %v262_v20 = vperm.slane %v1741_v19, 0 }
  0x58   :  { %569 = vmatpush.msra.mxu2 %v474_v26  ;;  %589 = vmatpush.msra.mxu3 %v436_v28  ;;  %v1747_v24 = vand.u32 127, %v219_v22 }
  0x59   :  { %549 = vmatpush.msrb.mxu1 %v417_v23  ;;  %612 = vmatpush.msrb.mxu0 %v484_v33 }
  0x5a   :  { %570 = vmatpush.msra.mxu2 %v471_v30  ;;  %590 = vmatpush.msra.mxu3 %v433_v32  ;;  %vm221_vm2 = vcmp.lt.s32.totalorder %v1747_v24, 64 }
  0x5b   :  { %550 = vmatpush.msrb.mxu1 %v414_v27  ;;  %613 = vmatpush.msrb.mxu0 %v481_v5 }
  0x5c   :  { %571 = vmatpush.msra.mxu2 %v468_v34  ;;  %591 = vmatpush.msra.mxu3 %v430_v36  ;;  %v488_v36 = vld [vmem:[%s1931_s9] sm:$0x7] }
  0x5d   :  { %551 = vmatpush.msrb.mxu1 %v411_v31  ;;  %614 = vmatpush.msrb.mxu0 %v478_v40  ;;  %v490_v5 = vperm.slane %v488_v36, 0  ;;  %v491_v40 = vperm.slane %v488_v36, 1 }
  0x5e   :  { %572 = vmatpush.msra.mxu2 %v465_v37  ;;  %592 = vmatpush.msra.mxu3 %v427_v39 }
  0x5f   :  { %552 = vmatpush.msrb.mxu1 %v408_v35  ;;  %308 = vmatmul.f32.gmra.mxu2 %v1712_v2  ;;  %v469_v2 = vld [vmem:[#allocation14 + $0x268] sm:$0xff] }
  0x60   :  { %573 = vmatpush.msra.mxu2 %v462_v41  ;;  %593 = vmatpush.msra.mxu3 %v424_v43 }
  0x61   :  { %553 = vmatpush.msrb.mxu1 %v405_v38  ;;  %615 = vmatpush.msrb.mxu0 %v475_v46 }
  0x62   :  { %574 = vmatpush.msra.mxu2 %v459_v44  ;;  %594 = vmatpush.msra.mxu3 %v421_v47  ;;  %v492_v44 = vperm.slane %v488_v36, 2  ;;  %v692_v36 = vld [vmem:[#allocation11 + $0x168] sm:$0xff] }
  0x63   :  { %554 = vmatpush.msrb.mxu1 %v402_v42  ;;  %616 = vmatpush.msrb.mxu0 %v472_v50 }
  0x64   :  { %575 = vmatpush.msra.mxu2 %v456_v48  ;;  %595 = vmatpush.msra.mxu3 %v418_v56  ;;  %v710_v48 = vld [vmem:[#allocation11 + $0x1f8] sm:$0xff] }
  0x65   :  { %555 = vmatpush.msrb.mxu1 %v399_v45  ;;  %617 = vmatpush.msrb.mxu0 %v469_v2 }
  0x66   :  { %576 = vmatpush.msra.mxu2 %v453_v51  ;;  %596 = vmatpush.msra.mxu3 %v415_v58  ;;  %v1760_v51 = vld [vmem:[#allocation10 + $0x18] sm:$0xff] }
  0x67   :  { %556 = vmatpush.msrb.mxu1 %v396_v49  ;;  %618 = vmatpush.msrb.mxu0 %v466_v59  ;;  %v708_v49 = vld [vmem:[#allocation11 + $0x1e8] sm:$0xff] }
  0x68   :  { %577 = vmatpush.msra.mxu2 %v450_v52  ;;  %597 = vmatpush.msra.mxu3 %v412_v60  ;;  %v1762_v52 = vld [vmem:[#allocation10 + $0x20] sm:$0xff]  ;;  %v704_v60 = vld [vmem:[#allocation11 + $0x1c8] sm:$0xff] }
  0x69   :  { %557 = vmatpush.msrb.mxu1 %v393_v54  ;;  %619 = vmatpush.msrb.mxu0 %v463_v61  ;;  %v706_v54 = vld [vmem:[#allocation11 + $0x1d8] sm:$0xff]  ;;  %v1766_v61 = vld [vmem:[#allocation10] sm:$0xff] }
  0x6a   :  { %578 = vmatpush.msra.mxu2 %v447_v53  ;;  %598 = vmatpush.msra.mxu3 %v409_v62  ;;  %v1768_v62 = vld [vmem:[#allocation10 + $0x8] sm:$0xff] }
  0x6b   :  { %620 = vmatpush.msrb.mxu0 %v460_v63 }
  0x6c   :  { %579 = vmatpush.msra.mxu2 %v444_v55  ;;  %599 = vmatpush.msra.mxu3 %v406_v0  ;;  %v1770_v0 = vld [vmem:[#allocation10 + $0x28] sm:$0xff] }
  0x6d   :  { %621 = vmatpush.msrb.mxu0 %v457_v1 }
  0x6e   :  { %580 = vmatpush.msra.mxu2 %v441_v57  ;;  %600 = vmatpush.msra.mxu3 %v403_v3 }
  0x6f   :  { %622 = vmatpush.msrb.mxu0 %v454_v4  ;;  %v702_v4 = vld [vmem:[#allocation11 + $0x1b8] sm:$0xff] }
  0x70   :  { %601 = vmatpush.msra.mxu3 %v400_v7  ;;  %741 = vmatpush.msrb.mxu2 %v710_v48  ;;  %v263_v7 = vperm.slane %v1741_v19, 1  ;;  %v930_v48 = vld [vmem:[#allocation14 + $0x5f0] sm:$0xff] }
  0x71   :  { %623 = vmatpush.msrb.mxu0 %v451_v8  ;;  %v1773_v8 = vld [vmem:[#allocation10 + $0x10] sm:$0xff] }
  0x72   :  { %602 = vmatpush.msra.mxu3 %v397_v9  ;;  %742 = vmatpush.msrb.mxu2 %v708_v49  ;;  %v691_v49 = vld [vmem:[#allocation11 + $0x160] sm:$0xff] }
  0x73   :  { %624 = vmatpush.msrb.mxu0 %v448_v10 }
  0x74   :  { %603 = vmatpush.msra.mxu3 %v394_v11  ;;  %743 = vmatpush.msrb.mxu2 %v706_v54  ;;  %v924_v54 = vld [vmem:[#allocation14 + $0x5c0] sm:$0xff] }
  0x75   :  { %625 = vmatpush.msrb.mxu0 %v445_v12 }
  0x76   :  { %744 = vmatpush.msrb.mxu2 %v704_v60  ;;  %v681_v60 = vld [vmem:[#allocation11 + $0x110] sm:$0xff] }
  0x77   :  { %626 = vmatpush.msrb.mxu0 %v442_v13  ;;  %v700_v13 = vld [vmem:[#allocation11 + $0x1a8] sm:$0xff] }
  0x78   :  { %745 = vmatpush.msrb.mxu2 %v702_v4 }
  0x7a   :  { %746 = vmatpush.msrb.mxu2 %v700_v13 }
  0xb1   :  { %v386_v14 = vpop.f32.mrf.mxu3 }
  0xb2   :  { %512 = vmatmul.f32.vlgmr.msrb.gmra.mxu3 %v386_v14  ;;  %558 = vmatmul.f32.vlgmr.msrb.gmra.mxu1 %v386_v14  ;;  %v1732_v16 = vpop.f32.mrf.mxu2 }
  0xb3   :  { %535 = vmatmul.f32.vlgmr.msra.gmra.mxu0 %v1732_v16  ;;  %581 = vmatmul.f32.vlgmr.msra.gmra.mxu2 %v1732_v16 }
  0xb9   :  { %v389_v17 = vpop.f32.mrf.mxu3 }
  0xba   :  { %515 = vmatmul.f32.gmra.mxu3 %v389_v17  ;;  %561 = vmatmul.f32.gmra.mxu1 %v389_v17  ;;  %v1736_v18 = vpop.f32.mrf.mxu2 }
  0xbb   :  { %538 = vmatmul.f32.gmra.mxu0 %v1736_v18  ;;  %584 = vmatmul.f32.gmra.mxu2 %v1736_v18 }
  0xc2   :  { %604 = vmatmul.f32.vlgmr.msra.gmra.mxu3 %v386_v14 }
  0xc3   :  { %627 = vmatmul.f32.vlgmr.msrb.gmra.mxu0 %v1732_v16 }
  0xc7   :  { %v283_v21 = vpop.f32.mrf.mxu1 }
  0xc8   :  { %v1744_v23 = vadd.f32 %v283_v21, %v262_v20  ;;  %v698_v21 = vld [vmem:[#allocation11 + $0x198] sm:$0xff] }
  0xc9   :  { %747 = vmatpush.msrb.mxu2 %v698_v21  ;;  %v894_v21 = vld [vmem:[#allocation14 + $0x4d0] sm:$0xff] }
  0xca   :  { %607 = vmatmul.f32.gmra.mxu3 %v389_v17 }
  0xcb   :  { %630 = vmatmul.f32.gmra.mxu0 %v1736_v18 }
  0xcf   :  { %v286_v25 = vpop.f32.mrf.mxu1 }
  0xd0   :  { %v287_v26 = vadd.f32 %v286_v25, %v262_v20 }
  0xd2   :  { %v1752_v27 = vsel %vm221_vm2, %v287_v26, -1e+30 }
  0xd3   :  { %316 = vmax.xlane.f32.xlu2 %v1752_v27 }
  0xd8   :  { %v1755_v28 = vpop.f32.mrf.mxu2 }
  0xe2   :  { %v309_v30 = vpop.f32.mrf.mxu2 }
  0xe3   :  { %v310_v14 = vadd.f32 %v309_v30, %v263_v7 }
 0x12f   :  { %v559_v32 = vpop.f32.mrf.mxu1 }
 0x130   :  { %v536_v29 = vpop.f32.mrf.mxu0  ;;  %v560_v50 = vadd.f32 %v559_v32, %v491_v40  ;;  %v1791_v32 = vsel %vm221_vm2, %v1744_v23, -1e+30  ;;  %v688_v23 = vld [vmem:[#allocation11 + $0x148] sm:$0xff] }
 0x135   :  { %v513_v31 = vpop.f32.mrf.mxu3 }
 0x136   :  { %v582_v34 = vpop.f32.mrf.mxu2  ;;  %v514_v45 = vadd.f32 %v513_v31, %v490_v5 }
 0x137   :  { %v562_v37 = vpop.f32.mrf.mxu1  ;;  %v583_v55 = vadd.f32 %v582_v34, %v560_v50  ;;  %v709_v34 = vld [vmem:[#allocation11 + $0x1f0] sm:$0xff]  ;;  %v927_v50 = vld [vmem:[#allocation14 + $0x5d8] sm:$0xff] }
 0x138   :  { %v539_v33 = vpop.f32.mrf.mxu0  ;;  %v563_v43 = vadd.f32 %v562_v37, %v491_v40  ;;  %v537_v2 = vadd.f32 %v536_v29, %v514_v45  ;;  %v307_v29 = vadd.f32 %v1755_v28, %v263_v7  ;;  %718 = vmatpush.msra.mxu1 %v709_v34  ;;  %v707_v28 = vld [vmem:[#allocation11 + $0x1e0] sm:$0xff]  ;;  %v690_v37 = vld [vmem:[#allocation11 + $0x158] sm:$0xff]  ;;  %v885_v34 = vld [vmem:[#allocation14 + $0x488] sm:$0xff] }
 0x139   :  { %v635_v10 = vmul.f32 %v583_v55, %v1768_v62  ;;  %v686_v40 = vld [vmem:[#allocation11 + $0x138] sm:$0xff]  ;;  %v695_v45 = vld [vmem:[#allocation11 + $0x180] sm:$0xff] }
 0x13a   :  { %v634_v9 = vmul.f32 %v537_v2, %v1766_v61  ;;  %719 = vmatpush.msra.mxu1 %v707_v28  ;;  %v687_v55 = vld [vmem:[#allocation11 + $0x140] sm:$0xff]  ;;  %v685_v2 = vld [vmem:[#allocation11 + $0x130] sm:$0xff] }
 0x13c   :  { %v640_v22 = vadd.f32 %v635_v10, %v634_v9  ;;  %v906_v9 = vld [vmem:[#allocation14 + $0x530] sm:$0xff]  ;;  %v903_v10 = vld [vmem:[#allocation14 + $0x518] sm:$0xff] }
 0x13d   :  { %v516_v35 = vpop.f32.mrf.mxu3 }
 0x13e   :  { %v517_v41 = vadd.f32 %v516_v35, %v490_v5  ;;  %v585_v42 = vpop.f32.mrf.mxu2  ;;  %v694_v35 = vld [vmem:[#allocation11 + $0x178] sm:$0xff]  ;;  %v705_v5 = vld [vmem:[#allocation11 + $0x1d0] sm:$0xff] }
 0x13f   :  { %v586_v47 = vadd.f32 %v585_v42, %v563_v43  ;;  %720 = vmatpush.msra.mxu1 %v705_v5  ;;  %v684_v42 = vld [vmem:[#allocation11 + $0x128] sm:$0xff]  ;;  %v697_v43 = vld [vmem:[#allocation11 + $0x190] sm:$0xff] }
 0x140   :  { %v628_v38 = vpop.f32.mrf.mxu0  ;;  %v540_v46 = vadd.f32 %v539_v33, %v517_v41  ;;  %v696_v33 = vld [vmem:[#allocation11 + $0x188] sm:$0xff]  ;;  %v699_v41 = vld [vmem:[#allocation11 + $0x1a0] sm:$0xff] }
 0x141   :  { %v638_v58 = vmul.f32 %v586_v47, %v1762_v52  ;;  %748 = vmatpush.msrb.mxu2 %v696_v33  ;;  %v693_v47 = vld [vmem:[#allocation11 + $0x170] sm:$0xff] }
 0x142   :  { %v637_v57 = vmul.f32 %v540_v46, %v1760_v51  ;;  %v680_v46 = vld [vmem:[#allocation11 + $0x108] sm:$0xff] }
 0x143   :  { %749 = vmatpush.msrb.mxu2 %v694_v35 }
 0x144   :  { %v641_v11 = vadd.f32 %v638_v58, %v637_v57  ;;  %v918_v57 = vld [vmem:[#allocation14 + $0x590] sm:$0xff]  ;;  %v683_v58 = vld [vmem:[#allocation11 + $0x120] sm:$0xff] }
 0x145   :  { %v605_v39 = vpop.f32.mrf.mxu3  ;;  %750 = vmatpush.msrb.mxu2 %v692_v36 }
 0x146   :  { %v606_v53 = vadd.f32 %v605_v39, %v492_v44  ;;  %v701_v39 = vld [vmem:[#allocation11 + $0x1b0] sm:$0xff] }
 0x147   :  { %751 = vmatpush.msrb.mxu2 %v690_v37 }
 0x148   :  { %v631_v63 = vpop.f32.mrf.mxu0  ;;  %v629_v1 = vadd.f32 %v628_v38, %v606_v53  ;;  %v703_v38 = vld [vmem:[#allocation11 + $0x1c0] sm:$0xff]  ;;  %v689_v53 = vld [vmem:[#allocation11 + $0x150] sm:$0xff] }
 0x149   :  { %721 = vmatpush.msra.mxu1 %v703_v38  ;;  %752 = vmatpush.msrb.mxu2 %v688_v23 }
 0x14a   :  { %v636_v17 = vmul.f32 %v629_v1, %v1773_v8  ;;  %v679_v1 = vld [vmem:[#allocation11 + $0x100] sm:$0xff] }
 0x14b   :  { %722 = vmatpush.msra.mxu1 %v701_v39  ;;  %753 = vmatpush.msrb.mxu2 %v686_v40 }
 0x14c   :  { %v642_v26 = vadd.f32 %v640_v22, %v636_v17  ;;  %v897_v17 = vld [vmem:[#allocation14 + $0x4e8] sm:$0xff] }
 0x14d   :  { %v608_v56 = vpop.f32.mrf.mxu3  ;;  %723 = vmatpush.msra.mxu1 %v699_v41  ;;  %754 = vmatpush.msrb.mxu2 %v684_v42 }
 0x14e   :  { %v609_v59 = vadd.f32 %v608_v56, %v492_v44  ;;  %v1784_v31 = vadd.f32 %v642_v26, %v307_v29  ;;  %v682_v44 = vld [vmem:[#allocation11 + $0x118] sm:$0xff]  ;;  %v921_v56 = vld [vmem:[#allocation14 + $0x5a8] sm:$0xff]  ;;  %v888_v29 = vld [vmem:[#allocation14 + $0x4a0] sm:$0xff] }
 0x14f   :  { %724 = vmatpush.msra.mxu1 %v697_v43  ;;  %755 = vmatpush.msrb.mxu2 %v682_v44  ;;  %v929_v44 = vld [vmem:[#allocation14 + $0x5e8] sm:$0xff] }
 0x150   :  { %v632_v3 = vadd.f32 %v631_v63, %v609_v59  ;;  %v646_v30 = vmul.f32 %v1784_v31, %v1784_v31  ;;  %v915_v59 = vld [vmem:[#allocation14 + $0x578] sm:$0xff]  ;;  %v912_v63 = vld [vmem:[#allocation14 + $0x560] sm:$0xff] }
 0x151   :  { %725 = vmatpush.msra.mxu1 %v695_v45  ;;  %756 = vmatpush.msrb.mxu2 %v680_v46  ;;  %v923_v45 = vld [vmem:[#allocation14 + $0x5b8] sm:$0xff]  ;;  %v920_v46 = vld [vmem:[#allocation14 + $0x5a0] sm:$0xff] }
 0x152   :  { %v639_v12 = vmul.f32 %v632_v3, %v1770_v0  ;;  %v909_v3 = vld [vmem:[#allocation14 + $0x548] sm:$0xff] }
 0x153   :  { %726 = vmatpush.msra.mxu1 %v693_v47  ;;  %1010 = vmatpush.msra.mxu2 %v930_v48  ;;  %v917_v47 = vld [vmem:[#allocation14 + $0x588] sm:$0xff]  ;;  %v911_v48 = vld [vmem:[#allocation14 + $0x558] sm:$0xff] }
 0x154   :  { %v643_v20 = vadd.f32 %v641_v11, %v639_v12  ;;  %v900_v11 = vld [vmem:[#allocation14 + $0x500] sm:$0xff] }
 0x155   :  { %727 = vmatpush.msra.mxu1 %v691_v49  ;;  %1011 = vmatpush.msra.mxu2 %v927_v50  ;;  %v908_v49 = vld [vmem:[#allocation14 + $0x540] sm:$0xff]  ;;  %v902_v50 = vld [vmem:[#allocation14 + $0x510] sm:$0xff] }
 0x156   :  { %v1779_v19 = vadd.f32 %v643_v20, %v310_v14 }
 0x157   :  { %728 = vmatpush.msra.mxu1 %v689_v53  ;;  %1012 = vmatpush.msra.mxu2 %v924_v54  ;;  %v899_v53 = vld [vmem:[#allocation14 + $0x4f8] sm:$0xff]  ;;  %v896_v54 = vld [vmem:[#allocation14 + $0x4e0] sm:$0xff] }
 0x158   :  { %v647_v25 = vmul.f32 %v1779_v19, %v1779_v19 }
 0x159   :  { %729 = vmatpush.msra.mxu1 %v687_v55  ;;  %1013 = vmatpush.msra.mxu2 %v921_v56  ;;  %v893_v55 = vld [vmem:[#allocation14 + $0x4c8] sm:$0xff]  ;;  %v887_v56 = vld [vmem:[#allocation14 + $0x498] sm:$0xff] }
 0x15a   :  { %650 = vadd.xlane.f32.xlu0 %v647_v25  ;;  %v891_v25 = vld [vmem:[#allocation14 + $0x4b8] sm:$0xff] }
 0x15b   :  { %730 = vmatpush.msra.mxu1 %v685_v2  ;;  %1014 = vmatpush.msra.mxu2 %v918_v57  ;;  %v884_v2 = vld [vmem:[#allocation14 + $0x480] sm:$0xff]  ;;  %v931_v57 = vld [vmem:[#allocation14 + $0x5f8] sm:$0xff] }
 0x15d   :  { %731 = vmatpush.msra.mxu1 %v683_v58  ;;  %1015 = vmatpush.msra.mxu2 %v915_v59  ;;  %v928_v58 = vld [vmem:[#allocation14 + $0x5e0] sm:$0xff]  ;;  %v925_v59 = vld [vmem:[#allocation14 + $0x5c8] sm:$0xff] }
 0x15f   :  { %732 = vmatpush.msra.mxu1 %v681_v60  ;;  %1016 = vmatpush.msra.mxu2 %v912_v63  ;;  %v922_v60 = vld [vmem:[#allocation14 + $0x5b0] sm:$0xff]  ;;  %v919_v63 = vld [vmem:[#allocation14 + $0x598] sm:$0xff] }
 0x161   :  { %733 = vmatpush.msra.mxu1 %v679_v1  ;;  %1017 = vmatpush.msra.mxu2 %v909_v3  ;;  %v916_v1 = vld [vmem:[#allocation14 + $0x580] sm:$0xff]  ;;  %v881_v3 = vld [vmem:[#allocation14 + $0x468] sm:$0xff] }
 0x162   :  { %648 = vadd.xlane.f32.xlu0 %v646_v30  ;;  %941 = vmatpush.msra.mxu0 %v881_v3  ;;  %v844_v3 = vld [vmem:[#allocation14 + $0x340] sm:$0xff] }
 0x163   :  { %1018 = vmatpush.msra.mxu2 %v906_v9  ;;  %v875_v9 = vld [vmem:[#allocation14 + $0x438] sm:$0xff] }
 0x165   :  { %1019 = vmatpush.msra.mxu2 %v903_v10  ;;  %v882_v10 = vld [vmem:[#allocation14 + $0x470] sm:$0xff] }
 0x166   :  { %987 = vmatpush.msrb.mxu1 %v882_v10 }
 0x167   :  { %1020 = vmatpush.msra.mxu2 %v900_v11  ;;  %v879_v11 = vld [vmem:[#allocation14 + $0x458] sm:$0xff] }
 0x168   :  { %988 = vmatpush.msrb.mxu1 %v879_v11 }
 0x169   :  { %1021 = vmatpush.msra.mxu2 %v897_v17  ;;  %v907_v17 = vld [vmem:[#allocation14 + $0x538] sm:$0xff] }
 0x16a   :  { %314 = vmax.xlane.f32.xlu0 %v1791_v32 }
 0x16b   :  { %1022 = vmatpush.msra.mxu2 %v894_v21  ;;  %v873_v21 = vld [vmem:[#allocation14 + $0x428] sm:$0xff] }
 0x16d   :  { %1023 = vmatpush.msra.mxu2 %v891_v25  ;;  %v866_v25 = vld [vmem:[#allocation14 + $0x3f0] sm:$0xff] }
 0x16f   :  { %1024 = vmatpush.msra.mxu2 %v888_v29  ;;  %v901_v29 = vld [vmem:[#allocation14 + $0x508] sm:$0xff] }
 0x171   :  { %1025 = vmatpush.msra.mxu2 %v885_v34  ;;  %v898_v34 = vld [vmem:[#allocation14 + $0x4f0] sm:$0xff] }
 0x1cd   :  { %v651_v4 = vpop.xlane.xlu0 %650 }
 0x1ce   :  { %v653_v7 = vmax.f32 %v651_v4, 1e-24  ;;  %v878_v4 = vld [vmem:[#allocation14 + $0x450] sm:$0xff] }
 0x1cf   :  { %942 = vmatpush.msra.mxu0 %v878_v4  ;;  %v841_v4 = vld [vmem:[#allocation14 + $0x328] sm:$0xff] }
 0x1d0   :  { %1303 = vrsqrt.f32 %v653_v7  ;;  %vm670_vm4 = vweird.f32 %v653_v7 }
 0x1d1   :  { %943 = vmatpush.msra.mxu0 %v875_v9  ;;  %v1806_v9 = vld [vmem:[#allocation13 + $0x2] sm:$0x3] }
 0x1d2   :  { %v714_v10 = vperm.slane %v1806_v9, 0 }
 0x1d5   :  { %v649_v12 = vpop.xlane.xlu0 %648 }
 0x1d6   :  { %v1304_v13 = vpop.eup %1303  ;;  %v652_v14 = vmax.f32 %v649_v12, 1e-24  ;;  %v910_v12 = vld [vmem:[#allocation14 + $0x550] sm:$0xff] }
 0x1d7   :  { %v665_v20 = vmul.f32 %v1304_v13, %v653_v7  ;;  %vm671_vm3 = vweird.f32 %v1304_v13  ;;  %v913_v7 = vld [vmem:[#allocation14 + $0x568] sm:$0xff] }
 0x1d8   :  { %1305 = vrsqrt.f32 %v652_v14  ;;  %vm672_vm5 = vmor %vm670_vm4, %vm671_vm3  ;;  %vm660_vm7 = vweird.f32 %v652_v14 }
 0x1d9   :  { %v666_v22 = vmul.f32 %v1304_v13, %v665_v20  ;;  %v869_v20 = vld [vmem:[#allocation14 + $0x408] sm:$0xff] }
 0x1db   :  { %v667_v26 = vmul.f32 0.5, %v666_v22  ;;  %v904_v22 = vld [vmem:[#allocation14 + $0x520] sm:$0xff] }
 0x1dd   :  { %v668_v30 = vsub.f32 1.5, %v667_v26  ;;  %v870_v26 = vld [vmem:[#allocation14 + $0x410] sm:$0xff] }
 0x1de   :  { %v1306_v33 = vpop.eup %1305 }
 0x1df   :  { %v669_v35 = vmul.f32 %v1304_v13, %v668_v30  ;;  %v655_v28 = vmul.f32 %v1306_v33, %v652_v14  ;;  %vm661_vm6 = vweird.f32 %v1306_v33  ;;  %v876_v14 = vld [vmem:[#allocation14 + $0x440] sm:$0xff]  ;;  %v863_v30 = vld [vmem:[#allocation14 + $0x3d8] sm:$0xff] }
 0x1e0   :  { %vm662_vm8 = vmor %vm660_vm7, %vm661_vm6  ;;  %989 = vmatpush.msrb.mxu1 %v876_v14 }
 0x1e1   :  { %v673_v36 = vsel %vm672_vm5, %v1304_v13, %v669_v35  ;;  %v656_v5 = vmul.f32 %v1306_v33, %v655_v28  ;;  %v872_v13 = vld [vmem:[#allocation14 + $0x420] sm:$0xff] }
 0x1e2   :  { %v675_v37 = vmul.f32 %v673_v36, %v1779_v19  ;;  %v926_v19 = vld [vmem:[#allocation14 + $0x5d0] sm:$0xff]  ;;  %944 = vmatpush.msra.mxu0 %v872_v13  ;;  %990 = vmatpush.msrb.mxu1 %v873_v21  ;;  %v860_v35 = vld [vmem:[#allocation14 + $0x3c0] sm:$0xff]  ;;  %v895_v36 = vld [vmem:[#allocation14 + $0x4d8] sm:$0xff] }
 0x1e3   :  { %v657_v38 = vmul.f32 0.5, %v656_v5  ;;  %v864_v28 = vld [vmem:[#allocation14 + $0x3e0] sm:$0xff]  ;;  %v857_v5 = vld [vmem:[#allocation14 + $0x3a8] sm:$0xff] }
 0x1e4   :  { %v677_v23 = vmax.f32 %v675_v37, 0.0  ;;  %945 = vmatpush.msra.mxu0 %v869_v20  ;;  %991 = vmatpush.msrb.mxu1 %v870_v26  ;;  %v861_v37 = vld [vmem:[#allocation14 + $0x3c8] sm:$0xff] }
 0x1e5   :  { %v658_v39 = vsub.f32 1.5, %v657_v38  ;;  %v892_v38 = vld [vmem:[#allocation14 + $0x4c0] sm:$0xff] }
 0x1e6   :  { %826 = vmatpush.msrb.mxu3 %v677_v23  ;;  %946 = vmatpush.msra.mxu0 %v866_v25 }
 0x1e7   :  { %v659_v40 = vmul.f32 %v1306_v33, %v658_v39  ;;  %v858_v39 = vld [vmem:[#allocation14 + $0x3b0] sm:$0xff] }
 0x1e8   :  { %947 = vmatpush.msra.mxu0 %v863_v30 }
 0x1e9   :  { %v663_v41 = vsel %vm662_vm8, %v1306_v33, %v659_v40  ;;  %v867_v33 = vld [vmem:[#allocation14 + $0x3f8] sm:$0xff]  ;;  %v889_v40 = vld [vmem:[#allocation14 + $0x4a8] sm:$0xff] }
 0x1ea   :  { %v674_v42 = vmul.f32 %v663_v41, %v1784_v31  ;;  %v914_v31 = vld [vmem:[#allocation14 + $0x570] sm:$0xff]  ;;  %992 = vmatpush.msrb.mxu1 %v867_v33  ;;  %948 = vmatpush.msra.mxu0 %v860_v35  ;;  %v851_v41 = vld [vmem:[#allocation14 + $0x378] sm:$0xff] }
 0x1ec   :  { %v676_v43 = vmax.f32 %v674_v42, 0.0  ;;  %993 = vmatpush.msrb.mxu1 %v864_v28  ;;  %949 = vmatpush.msra.mxu0 %v857_v5  ;;  %v855_v42 = vld [vmem:[#allocation14 + $0x398] sm:$0xff]  ;;  %v1266_v28 = vld [vmem:[%s1931_s9 + $0x3] sm:$0x7] }
 0x1ed   :  { %v935_v5 = vperm.slane %v1266_v28, 0 }
 0x1ee   :  { %734 = vmatmul.f32.vlgmr.msra.gmra.mxu1 %v676_v43  ;;  %757 = vmatmul.f32.vlgmr.msrb.gmra.mxu2 %v676_v43 }
 0x1ef   :  { %827 = vmatpush.msrb.mxu3 %v676_v43  ;;  %994 = vmatpush.msrb.mxu1 %v861_v37  ;;  %v886_v43 = vld [vmem:[#allocation14 + $0x490] sm:$0xff]  ;;  %v936_v37 = vperm.slane %v1266_v28, 1 }
 0x1f0   :  { %1264 = vmatmul.msk.f32.vlgmr.msrb.gmra.mxu3 %vm362_vm0, %v1717_v6  ;;  %v905_v6 = vld [vmem:[#allocation14 + $0x528] sm:$0xff] }
 0x1f1   :  { %964 = vmatpush.msra.mxu3 %v929_v44  ;;  %v848_v44 = vld [vmem:[#allocation14 + $0x360] sm:$0xff]  ;;  %995 = vmatpush.msrb.mxu1 %v858_v39 }
 0x1f3   :  { %965 = vmatpush.msra.mxu3 %v926_v19  ;;  %v852_v19 = vld [vmem:[#allocation14 + $0x380] sm:$0xff]  ;;  %996 = vmatpush.msrb.mxu1 %v855_v42 }
 0x1f5   :  { %966 = vmatpush.msra.mxu3 %v923_v45  ;;  %v845_v45 = vld [vmem:[#allocation14 + $0x348] sm:$0xff]  ;;  %997 = vmatpush.msrb.mxu1 %v852_v19 }
 0x1f6   :  { %737 = vmatmul.f32.gmra.mxu1 %v677_v23  ;;  %760 = vmatmul.f32.gmra.mxu2 %v677_v23  ;;  %v854_v23 = vld [vmem:[#allocation14 + $0x390] sm:$0xff] }
 0x1f7   :  { %967 = vmatpush.msra.mxu3 %v920_v46  ;;  %950 = vmatpush.msra.mxu0 %v854_v23  ;;  %v849_v46 = vld [vmem:[#allocation14 + $0x368] sm:$0xff] }
 0x1f8   :  { %1265 = vmatmul.msk.f32.gmra.mxu3 %vm362_vm0, %v1723_v15  ;;  %v890_v15 = vld [vmem:[#allocation14 + $0x4b0] sm:$0xff]  ;;  %998 = vmatpush.msrb.mxu1 %v849_v46 }
 0x1f9   :  { %968 = vmatpush.msra.mxu3 %v917_v47  ;;  %951 = vmatpush.msra.mxu0 %v851_v41  ;;  %v842_v47 = vld [vmem:[#allocation14 + $0x330] sm:$0xff]  ;;  %v937_v41 = vperm.slane %v1266_v28, 2 }
 0x1fb   :  { %969 = vmatpush.msra.mxu3 %v914_v31  ;;  %952 = vmatpush.msra.mxu0 %v848_v44  ;;  %v839_v31 = vld [vmem:[#allocation14 + $0x318] sm:$0xff] }
 0x1fd   :  { %970 = vmatpush.msra.mxu3 %v911_v48  ;;  %953 = vmatpush.msra.mxu0 %v845_v45  ;;  %v836_v48 = vld [vmem:[#allocation14 + $0x300] sm:$0xff] }
 0x1fe   :  { %1026 = vmatmul.f32.vlgmr.msra.gmra.mxu2 %v1732_v16 }
 0x1ff   :  { %971 = vmatpush.msra.mxu3 %v908_v49  ;;  %954 = vmatpush.msra.mxu0 %v842_v47  ;;  %v883_v49 = vld [vmem:[#allocation14 + $0x478] sm:$0xff] }
 0x201   :  { %972 = vmatpush.msra.mxu3 %v905_v6  ;;  %955 = vmatpush.msra.mxu0 %v839_v31  ;;  %v880_v6 = vld [vmem:[#allocation14 + $0x460] sm:$0xff] }
 0x203   :  { %973 = vmatpush.msra.mxu3 %v902_v50  ;;  %956 = vmatpush.msra.mxu0 %v836_v48  ;;  %v877_v50 = vld [vmem:[#allocation14 + $0x448] sm:$0xff] }
 0x205   :  { %974 = vmatpush.msra.mxu3 %v899_v53  ;;  %1033 = vmatpush.msrb.mxu0 %v883_v49  ;;  %v874_v53 = vld [vmem:[#allocation14 + $0x430] sm:$0xff] }
 0x206   :  { %1029 = vmatmul.f32.gmra.mxu2 %v1736_v18 }
 0x207   :  { %975 = vmatpush.msra.mxu3 %v896_v54  ;;  %1034 = vmatpush.msrb.mxu0 %v880_v6  ;;  %v871_v54 = vld [vmem:[#allocation14 + $0x418] sm:$0xff] }
 0x209   :  { %976 = vmatpush.msra.mxu3 %v893_v55  ;;  %1035 = vmatpush.msrb.mxu0 %v877_v50  ;;  %v843_v55 = vld [vmem:[#allocation14 + $0x338] sm:$0xff] }
 0x20b   :  { %977 = vmatpush.msra.mxu3 %v890_v15  ;;  %1036 = vmatpush.msrb.mxu0 %v874_v53  ;;  %v868_v15 = vld [vmem:[#allocation14 + $0x400] sm:$0xff] }
 0x20d   :  { %978 = vmatpush.msra.mxu3 %v887_v56  ;;  %1037 = vmatpush.msrb.mxu0 %v871_v54  ;;  %v840_v56 = vld [vmem:[#allocation14 + $0x320] sm:$0xff] }
 0x20f   :  { %979 = vmatpush.msra.mxu3 %v884_v2  ;;  %v865_v2 = vld [vmem:[#allocation14 + $0x3e8] sm:$0xff]  ;;  %1038 = vmatpush.msrb.mxu0 %v868_v15 }
 0x210   :  { %980 = vmatmul.f32.vlgmr.msra.gmra.mxu3 %v1732_v16 }
 0x211   :  { %1056 = vmatpush.msrb.mxu3 %v931_v57  ;;  %1039 = vmatpush.msrb.mxu0 %v865_v2  ;;  %v837_v57 = vld [vmem:[#allocation14 + $0x308] sm:$0xff] }
 0x213   :  { %1057 = vmatpush.msrb.mxu3 %v928_v58  ;;  %v859_v58 = vld [vmem:[#allocation14 + $0x3b8] sm:$0xff] }
 0x215   :  { %1058 = vmatpush.msrb.mxu3 %v925_v59  ;;  %v856_v59 = vld [vmem:[#allocation14 + $0x3a0] sm:$0xff] }
 0x217   :  { %1059 = vmatpush.msrb.mxu3 %v922_v60  ;;  %v853_v60 = vld [vmem:[#allocation14 + $0x388] sm:$0xff] }
 0x218   :  { %983 = vmatmul.f32.gmra.mxu3 %v1736_v18 }
 0x219   :  { %1060 = vmatpush.msrb.mxu3 %v919_v63  ;;  %v850_v63 = vld [vmem:[#allocation14 + $0x370] sm:$0xff] }
 0x21b   :  { %1061 = vmatpush.msrb.mxu3 %v916_v1  ;;  %v847_v1 = vld [vmem:[#allocation14 + $0x358] sm:$0xff] }
 0x21d   :  { %1062 = vmatpush.msrb.mxu3 %v913_v7  ;;  %v838_v7 = vld [vmem:[#allocation14 + $0x310] sm:$0xff] }
 0x21f   :  { %1063 = vmatpush.msrb.mxu3 %v910_v12 }
 0x221   :  { %1064 = vmatpush.msrb.mxu3 %v907_v17 }
 0x223   :  { %1065 = vmatpush.msrb.mxu3 %v904_v22 }
 0x225   :  { %1066 = vmatpush.msrb.mxu3 %v901_v29 }
 0x227   :  { %1067 = vmatpush.msrb.mxu3 %v898_v34 }
 0x229   :  { %1068 = vmatpush.msrb.mxu3 %v895_v36 }
 0x22b   :  { %1069 = vmatpush.msrb.mxu3 %v892_v38 }
 0x22d   :  { %1070 = vmatpush.msrb.mxu3 %v889_v40 }
 0x22f   :  { %1071 = vmatpush.msrb.mxu3 %v886_v43 }
 0x230   :  { %1072 = vmatmul.f32.vlgmr.msrb.gmra.mxu3 %v1732_v16  ;;  %v846_v16 = vld [vmem:[#allocation14 + $0x350] sm:$0xff] }
 0x231   :  { %999 = vmatpush.msrb.mxu1 %v846_v16 }
 0x233   :  { %1000 = vmatpush.msrb.mxu1 %v843_v55  ;;  %v715_v55 = vperm.slane %v1806_v9, 1 }
 0x235   :  { %1001 = vmatpush.msrb.mxu1 %v840_v56 }
 0x237   :  { %1002 = vmatpush.msrb.mxu1 %v837_v57 }
 0x238   :  { %1075 = vmatmul.f32.gmra.mxu3 %v1736_v18  ;;  %v862_v18 = vld [vmem:[#allocation14 + $0x3d0] sm:$0xff] }
 0x239   :  { %1040 = vmatpush.msrb.mxu0 %v862_v18  ;;  %v1138_v18 = vld [vmem:[#allocation16 + $0x78] sm:$0xff] }
 0x23a   :  { %1268 = vmatpush.msra.mxu1 %v1138_v18 }
 0x23b   :  { %1041 = vmatpush.msrb.mxu0 %v859_v58  ;;  %v1137_v58 = vld [vmem:[#allocation16 + $0x70] sm:$0xff] }
 0x23c   :  { %1269 = vmatpush.msra.mxu1 %v1137_v58 }
 0x23d   :  { %1042 = vmatpush.msrb.mxu0 %v856_v59 }
 0x23f   :  { %1043 = vmatpush.msrb.mxu0 %v853_v60  ;;  %v1136_v60 = vld [vmem:[#allocation16 + $0x68] sm:$0xff] }
 0x240   :  { %1270 = vmatpush.msra.mxu1 %v1136_v60 }
 0x241   :  { %1044 = vmatpush.msrb.mxu0 %v850_v63 }
 0x243   :  { %1045 = vmatpush.msrb.mxu0 %v847_v1 }
 0x245   :  { %1046 = vmatpush.msrb.mxu0 %v844_v3 }
 0x247   :  { %1047 = vmatpush.msrb.mxu0 %v841_v4 }
 0x249   :  { %1048 = vmatpush.msrb.mxu0 %v838_v7 }
 0x26b   :  { %v735_v11 = vpop.f32.mrf.mxu1 }
 0x26c   :  { %v1809_v12 = vadd.f32 %v735_v11, %v714_v10 }
 0x26e   :  { %v764_v11 = vsel %vm221_vm2, %v1809_v12, -1e+30  ;;  %v1129_v12 = vld [vmem:[#allocation16 + $0x30] sm:$0xff] }
 0x271   :  { %v758_v22 = vpop.f32.mrf.mxu2 }
 0x272   :  { %v759_v3 = vadd.f32 %v758_v22, %v715_v55  ;;  %v1130_v22 = vld [vmem:[#allocation16 + $0x38] sm:$0xff] }
 0x273   :  { %v829_v13 = vpop.f32.mrf.mxu3  ;;  %v738_v14 = vpop.f32.mrf.mxu1 }
 0x274   :  { %v739_v17 = vadd.f32 %v738_v14, %v714_v10  ;;  %957 = vmatmul.f32.vlgmr.msra.gmra.mxu0 %v829_v13  ;;  %1003 = vmatmul.f32.vlgmr.msrb.gmra.mxu1 %v829_v13  ;;  %v1134_v14 = vld [vmem:[#allocation16 + $0x58] sm:$0xff] }
 0x275   :  { %1143 = vmatpush.msra.mxu0 %v1138_v18 }
 0x276   :  { %v1813_v20 = vsel %vm221_vm2, %v739_v17, -1e+30  ;;  %v1133_v17 = vld [vmem:[#allocation16 + $0x50] sm:$0xff] }
 0x277   :  { %768 = vmax.xlane.f32.xlu2 %v1813_v20  ;;  %1144 = vmatpush.msra.mxu0 %v1137_v58 }
 0x279   :  { %v761_v26 = vpop.f32.mrf.mxu2  ;;  %1145 = vmatpush.msra.mxu0 %v1136_v60 }
 0x27b   :  { %v832_v21 = vpop.f32.mrf.mxu3 }
 0x27c   :  { %960 = vmatmul.f32.gmra.mxu0 %v832_v21  ;;  %1006 = vmatmul.f32.gmra.mxu1 %v832_v21 }
 0x281   :  { %v1027_v35 = vpop.f32.mrf.mxu2 }
 0x284   :  { %1049 = vmatmul.f32.vlgmr.msrb.gmra.mxu0 %v829_v13 }
 0x289   :  { %v1030_v42 = vpop.f32.mrf.mxu2 }
 0x28c   :  { %1052 = vmatmul.f32.gmra.mxu0 %v832_v21  ;;  %v1132_v21 = vld [vmem:[#allocation16 + $0x48] sm:$0xff] }
 0x293   :  { %v981_v25 = vpop.f32.mrf.mxu3 }
 0x29b   :  { %v984_v33 = vpop.f32.mrf.mxu3 }
 0x2b3   :  { %v1073_v38 = vpop.f32.mrf.mxu3 }
 0x2bb   :  { %v1076_v53 = vpop.f32.mrf.mxu3 }
 0x2f1   :  { %v958_v29 = vpop.f32.mrf.mxu0  ;;  %v1004_v30 = vpop.f32.mrf.mxu1 }
 0x2f2   :  { %v959_v43 = vadd.f32 %v958_v29, %v935_v5  ;;  %v1005_v44 = vadd.f32 %v1004_v30, %v936_v37  ;;  %v1126_v29 = vld [vmem:[#allocation16 + $0x18] sm:$0xff]  ;;  %v1125_v30 = vld [vmem:[#allocation16 + $0x10] sm:$0xff] }
 0x2f4   :  { %v982_v47 = vadd.f32 %v981_v25, %v959_v43  ;;  %v1028_v48 = vadd.f32 %v1027_v35, %v1005_v44  ;;  %v1128_v25 = vld [vmem:[#allocation16 + $0x28] sm:$0xff] }
 0x2f6   :  { %v1079_v15 = vmul.f32 %v982_v47, %v1766_v61  ;;  %v1080_v56 = vmul.f32 %v1028_v48, %v1768_v62  ;;  %v1135_v61 = vld [vmem:[#allocation16 + $0x60] sm:$0xff] }
 0x2f7   :  { %1271 = vmatpush.msra.mxu1 %v1135_v61  ;;  %1146 = vmatpush.msra.mxu0 %v1135_v61 }
 0x2f8   :  { %v1085_v63 = vadd.f32 %v1080_v56, %v1079_v15 }
 0x2f9   :  { %v961_v34 = vpop.f32.mrf.mxu0  ;;  %v1007_v36 = vpop.f32.mrf.mxu1  ;;  %1272 = vmatpush.msra.mxu1 %v1134_v14  ;;  %1147 = vmatpush.msra.mxu0 %v1134_v14 }
 0x2fa   :  { %v962_v39 = vadd.f32 %v961_v34, %v935_v5  ;;  %v1008_v40 = vadd.f32 %v1007_v36, %v936_v37  ;;  %v1123_v34 = vld [vmem:[#allocation16] sm:$0xff] }
 0x2fb   :  { %1273 = vmatpush.msra.mxu1 %v1133_v17  ;;  %1148 = vmatpush.msra.mxu0 %v1133_v17 }
 0x2fc   :  { %v985_v19 = vadd.f32 %v984_v33, %v962_v39  ;;  %v1031_v45 = vadd.f32 %v1030_v42, %v1008_v40  ;;  %v1124_v33 = vld [vmem:[#allocation16 + $0x8] sm:$0xff] }
 0x2fd   :  { %1274 = vmatpush.msra.mxu1 %v1132_v21  ;;  %1149 = vmatpush.msra.mxu0 %v1132_v21 }
 0x2fe   :  { %v1082_v49 = vmul.f32 %v985_v19, %v1760_v51  ;;  %v1083_v6 = vmul.f32 %v1031_v45, %v1762_v52  ;;  %v762_v51 = vadd.f32 %v761_v26, %v715_v55  ;;  %v1127_v26 = vld [vmem:[#allocation16 + $0x20] sm:$0xff] }
 0x300   :  { %v1086_v57 = vadd.f32 %v1083_v6, %v1082_v49 }
 0x301   :  { %v1050_v23 = vpop.f32.mrf.mxu0 }
 0x302   :  { %v1051_v46 = vadd.f32 %v1050_v23, %v937_v41 }
 0x304   :  { %v1074_v16 = vadd.f32 %v1073_v38, %v1051_v46 }
 0x306   :  { %v1081_v52 = vmul.f32 %v1074_v16, %v1773_v8  ;;  %v317_v8 = vpop.xlane.xlu2 %316 }
 0x307   :  { %v319_v9 = vsub.f32 %v1752_v27, %v317_v8  ;;  %v1131_v27 = vld [vmem:[#allocation16 + $0x40] sm:$0xff] }
 0x308   :  { %1275 = vmatpush.msra.mxu1 %v1131_v27  ;;  %1150 = vmatpush.msra.mxu0 %v1131_v27 }
 0x309   :  { %v1053_v31 = vpop.f32.mrf.mxu0  ;;  %v322_v10 = vmul.f32 1.442695, %v319_v9 }
 0x30a   :  { %v1054_v50 = vadd.f32 %v1053_v31, %v937_v41  ;;  %1276 = vmatpush.msra.mxu1 %v1130_v22  ;;  %1151 = vmatpush.msra.mxu0 %v1130_v22 }
 0x30b   :  { %1307 = vpow2.f32 %v322_v10 }
 0x30c   :  { %v1077_v54 = vadd.f32 %v1076_v53, %v1054_v50  ;;  %1277 = vmatpush.msra.mxu1 %v1129_v12  ;;  %1152 = vmatpush.msra.mxu0 %v1129_v12 }
 0x30e   :  { %v1084_v2 = vmul.f32 %v1077_v54, %v1770_v0  ;;  %v1087_v0 = vadd.f32 %v1085_v63, %v1081_v52  ;;  %1278 = vmatpush.msra.mxu1 %v1128_v25  ;;  %1153 = vmatpush.msra.mxu0 %v1128_v25  ;;  %v769_v15 = vpop.xlane.xlu2 %768 }
 0x30f   :  { %v771_v56 = vsub.f32 %v1813_v20, %v769_v15 }
 0x310   :  { %v1088_v59 = vadd.f32 %v1086_v57, %v1084_v2  ;;  %v1830_v4 = vadd.f32 %v1087_v0, %v759_v3  ;;  %1279 = vmatpush.msra.mxu1 %v1127_v26  ;;  %1154 = vmatpush.msra.mxu0 %v1127_v26  ;;  %v1302_v2 = vld [vmem:[%s1933_s11] ss:$0 sm:$0xff] }
 0x311   :  { %v1838_v13 = vpop.eup %1307  ;;  %v774_v18 = vmul.f32 1.442695, %v771_v56 }
 0x312   :  { %v1826_v1 = vadd.f32 %v1088_v59, %v762_v51  ;;  %v1091_v7 = vmul.f32 %v1830_v4, %v1830_v4  ;;  %1280 = vmatpush.msra.mxu1 %v1126_v29  ;;  %1155 = vmatpush.msra.mxu0 %v1126_v29  ;;  %v315_v51 = vpop.xlane.xlu0 %314 }
 0x313   :  { %v318_v59 = vsub.f32 %v1791_v32, %v315_v51 }
 0x314   :  { %v1092_v62 = vmul.f32 %v1826_v1, %v1826_v1  ;;  %1281 = vmatpush.msra.mxu1 %v1125_v30  ;;  %1156 = vmatpush.msra.mxu0 %v1125_v30 }
 0x315   :  { %v320_v63 = vmul.f32 1.442695, %v318_v59 }
 0x316   :  { %1095 = vadd.xlane.f32.xlu1 %v1092_v62  ;;  %1282 = vmatpush.msra.mxu1 %v1124_v33 }
 0x317   :  { %1157 = vmatpush.msra.mxu0 %v1124_v33 }
 0x318   :  { %1283 = vmatpush.msra.mxu1 %v1123_v34 }
 0x319   :  { %1158 = vmatpush.msra.mxu0 %v1123_v34 }
 0x31e   :  { %1093 = vadd.xlane.f32.xlu1 %v1091_v7 }
 0x326   :  { %766 = vmax.xlane.f32.xlu1 %v764_v11 }
 0x32e   :  { %326 = vadd.xlane.f32.xlu1 %v1838_v13 }
 0x389   :  { %v1096_v35 = vpop.xlane.xlu1 %1095 }
 0x38a   :  { %v1098_v28 = vmax.f32 %v1096_v35, 1e-24 }
 0x38c   :  { %1309 = vrsqrt.f32 %v1098_v28  ;;  %vm1115_vm10 = vweird.f32 %v1098_v28 }
 0x391   :  { %v1094_v36 = vpop.xlane.xlu1 %1093 }
 0x392   :  { %v1310_v5 = vpop.eup %1309  ;;  %v1097_v37 = vmax.f32 %v1094_v36, 1e-24 }
 0x393   :  { %v1110_v38 = vmul.f32 %v1310_v5, %v1098_v28  ;;  %vm1116_vm9 = vweird.f32 %v1310_v5 }
 0x394   :  { %1311 = vrsqrt.f32 %v1097_v37  ;;  %vm1117_vm11 = vmor %vm1115_vm10, %vm1116_vm9  ;;  %vm1105_vm13 = vweird.f32 %v1097_v37 }
 0x395   :  { %v1111_v23 = vmul.f32 %v1310_v5, %v1110_v38 }
 0x397   :  { %v1112_v39 = vmul.f32 0.5, %v1111_v23 }
 0x399   :  { %v1113_v40 = vsub.f32 1.5, %v1112_v39  ;;  %v767_v41 = vpop.xlane.xlu1 %766 }
 0x39a   :  { %v1312_v42 = vpop.eup %1311  ;;  %v770_v43 = vsub.f32 %v764_v11, %v767_v41 }
 0x39b   :  { %v1114_v44 = vmul.f32 %v1310_v5, %v1113_v40  ;;  %v1100_v19 = vmul.f32 %v1312_v42, %v1097_v37  ;;  %vm1106_vm12 = vweird.f32 %v1312_v42 }
 0x39c   :  { %v772_v45 = vmul.f32 1.442695, %v770_v43  ;;  %vm1107_vm14 = vmor %vm1105_vm13, %vm1106_vm12 }
 0x39d   :  { %v1118_v46 = vsel %vm1117_vm11, %v1310_v5, %v1114_v44  ;;  %v1101_v47 = vmul.f32 %v1312_v42, %v1100_v19 }
 0x39e   :  { %1313 = vpow2.f32 %v772_v45  ;;  %v1120_v31 = vmul.f32 %v1118_v46, %v1826_v1 }
 0x39f   :  { %v1102_v48 = vmul.f32 0.5, %v1101_v47  ;;  %1315 = vpow2.f32 %v774_v18 }
 0x3a0   :  { %v1122_v49 = vmax.f32 %v1120_v31, 0.0  ;;  %1317 = vpow2.f32 %v320_v63 }
 0x3a1   :  { %v1103_v6 = vsub.f32 1.5, %v1102_v48  ;;  %v327_v10 = vpop.xlane.xlu1 %326 }
 0x3a2   :  { %1162 = vmatmul.f32.vlgmr.msra.gmra.mxu1 %v1122_v49  ;;  %v354_v37 = vand.u32 2147483648, %v327_v10  ;;  %v352_v23 = vand.u32 2147483647, %v327_v10 }
 0x3a3   :  { %v1104_v50 = vmul.f32 %v1312_v42, %v1103_v6 }
 0x3a4   :  { %v1842_v53 = vpop.eup %1313  ;;  %v355_v19 = vor.u32 1.1754944e-38, %v354_v37  ;;  %vm353_vm6 = vcmp.eq.f32.partialorder %v352_v23, 8.507059e+37 }
 0x3a5   :  { %v1108_v16 = vsel %vm1107_vm14, %v1312_v42, %v1104_v50  ;;  %776 = vadd.xlane.f32.xlu1 %v1842_v53  ;;  %v1853_v61 = vpop.eup %1315 }
 0x3a6   :  { %v1119_v54 = vmul.f32 %v1108_v16, %v1830_v4  ;;  %v1858_v62 = vpop.eup %1317 }
 0x3a8   :  { %v1121_v55 = vmax.f32 %v1119_v54, 0.0 }
 0x3aa   :  { %1159 = vmatmul.f32.vlgmr.msra.gmra.mxu0 %v1121_v55 }
 0x418   :  { %v1869_v22 = vpop.xlane.xlu1 %776 }
 0x419   :  { %vm785_vm14 = vweird.f32 %v1869_v22  ;;  %v791_v63 = vand.u32 2147483648, %v1869_v22 }
 0x41f   :  { %v1163_v57 = vpop.f32.mrf.mxu1 }
 0x420   :  { %v1164_v58 = vadd.f32 %v1302_v2, %v1163_v57 }
 0x422   :  { %v1167_v52 = vsel %vm221_vm2, %v1164_v58, -1e+30 }
 0x423   :  { %1170 = vmax.xlane.f32.xlu2 %v1167_v52 }
 0x427   :  { %v1160_v60 = vpop.f32.mrf.mxu0 }
 0x428   :  { %v1161_v1 = vadd.f32 %v1302_v2, %v1160_v60 }
 0x42a   :  { %v1166_v20 = vsel %vm221_vm2, %v1161_v1, -1e+30  ;;  %vm348_vm2 = vweird.f32 %v327_v10 }
 0x42b   :  { %778 = vadd.xlane.f32.xlu2 %v1853_v61  ;;  %1168 = vmax.xlane.f32.xlu0 %v1166_v20 }
 0x433   :  { %324 = vadd.xlane.f32.xlu0 %v1858_v62 }
 0x496   :  { %v1171_v0 = vpop.xlane.xlu2 %1170 }
 0x497   :  { %v1173_v3 = vsub.f32 %v1167_v52, %v1171_v0 }
 0x499   :  { %v1176_v32 = vmul.f32 1.442695, %v1173_v3 }
 0x49b   :  { %1319 = vpow2.f32 %v1176_v32 }
 0x49e   :  { %v1169_v4 = vpop.xlane.xlu0 %1168  ;;  %v779_v11 = vpop.xlane.xlu2 %778 }
 0x49f   :  { %v1172_v8 = vsub.f32 %v1166_v20, %v1169_v4  ;;  %v806_v39 = vand.u32 2147483648, %v779_v11  ;;  %vm800_vm4 = vweird.f32 %v779_v11  ;;  %v804_v41 = vand.u32 2147483647, %v779_v11 }
 0x4a1   :  { %v1861_v7 = vpop.eup %1319  ;;  %v1174_v9 = vmul.f32 1.442695, %v1172_v8  ;;  %v807_v47 = vor.u32 1.1754944e-38, %v806_v39  ;;  %vm805_vm7 = vcmp.eq.f32.partialorder %v804_v41, 8.507059e+37 }
 0x4a2   :  { %1180 = vadd.xlane.f32.xlu2 %v1861_v7 }
 0x4a3   :  { %1321 = vpow2.f32 %v1174_v9 }
 0x4a4   :  { %1323 = vrcp.f32 %v327_v10 }
 0x4a5   :  { %1325 = vrcp.f32 %v779_v11 }
 0x4a6   :  { %v1867_v21 = vpop.xlane.xlu0 %324 }
 0x4a7   :  { %1327 = vrcp.f32 %v1867_v21  ;;  %v339_v57 = vand.u32 2147483648, %v1867_v21  ;;  %vm333_vm12 = vweird.f32 %v1867_v21  ;;  %v337_v52 = vand.u32 2147483647, %v1867_v21 }
 0x4a8   :  { %1329 = vrcp.f32 %v1869_v22 }
 0x4a9   :  { %v1864_v24 = vpop.eup %1321  ;;  %v340_v4 = vor.u32 1.1754944e-38, %v339_v57 }
 0x4aa   :  { %1178 = vadd.xlane.f32.xlu0 %v1864_v24  ;;  %v1324_v14 = vpop.eup %1323 }
 0x4ab   :  { %v1326_v17 = vpop.eup %1325  ;;  %v344_v27 = vmul.f32 %v1324_v14, %v327_v10  ;;  %vm349_vm15 = vweird.f32 %v1324_v14 }
 0x4ac   :  { %v796_v12 = vmul.f32 %v1326_v17, %v779_v11  ;;  %vm801_vm1 = vweird.f32 %v1326_v17  ;;  %vm350_vm3 = vmor %vm348_vm2, %vm349_vm15 }
 0x4ad   :  { %v345_v25 = vsub.f32 1.0, %v344_v27  ;;  %v1873_v29 = vpop.eup %1327  ;;  %vm802_vm5 = vmor %vm800_vm4, %vm801_vm1 }
 0x4ae   :  { %v797_v26 = vsub.f32 1.0, %v796_v12  ;;  %v1875_v33 = vpop.eup %1329  ;;  %v329_v28 = vmul.f32 %v1873_v29, %v1867_v21  ;;  %vm334_vm10 = vweird.f32 %v1873_v29 }
 0x4af   :  { %v346_v30 = vmul.f32 %v1324_v14, %v345_v25  ;;  %v781_v5 = vmul.f32 %v1875_v33, %v1869_v22  ;;  %vm786_vm9 = vweird.f32 %v1875_v33  ;;  %vm1894_vm15 = vmor %vm333_vm12, %vm334_vm10 }
 0x4b0   :  { %v798_v34 = vmul.f32 %v1326_v17, %v797_v26  ;;  %v330_v40 = vsub.f32 1.0, %v329_v28  ;;  %vm1904_vm2 = vmor %vm785_vm14, %vm786_vm9 }
 0x4b1   :  { %v347_v36 = vadd.f32 %v1324_v14, %v346_v30  ;;  %v782_v44 = vsub.f32 1.0, %v781_v5  ;;  %v1214_v5 = vld [vmem:[%s1926_s4] sm:$0x3] }
 0x4b2   :  { %v799_v38 = vadd.f32 %v1326_v17, %v798_v34  ;;  %v331_v31 = vmul.f32 %v1873_v29, %v330_v40 }
 0x4b3   :  { %v351_v43 = vsel %vm350_vm3, %v1324_v14, %v347_v36  ;;  %v783_v50 = vmul.f32 %v1875_v33, %v782_v44  ;;  %vm338_vm3 = vcmp.eq.f32.partialorder %v337_v52, 8.507059e+37  ;;  %v792_v14 = vor.u32 1.1754944e-38, %v791_v63 }
 0x4b4   :  { %v803_v45 = vsel %vm802_vm5, %v1326_v17, %v799_v38  ;;  %v356_v49 = vsel %vm353_vm6, %v355_v19, %v351_v43  ;;  %v332_v56 = vadd.f32 %v1873_v29, %v331_v31 }
 0x4b5   :  { %v808_v16 = vsel %vm805_vm7, %v807_v47, %v803_v45  ;;  %v357_v2 = vmul.f32 %v1838_v13, %v356_v49  ;;  %v784_v51 = vadd.f32 %v1875_v33, %v783_v50 }
 0x4b6   :  { %v809_v58 = vmul.f32 %v1853_v61, %v808_v16  ;;  %v789_v61 = vand.u32 2147483647, %v1869_v22  ;;  %v336_v3 = vsel %vm1894_vm15, %v1873_v29, %v332_v56 }
 0x4b7   :  { %v788_v10 = vsel %vm1904_vm2, %v1875_v33, %v784_v51  ;;  %v341_v27 = vsel %vm338_vm3, %v340_v4, %v336_v3 }
 0x4b8   :  { %v811_v8 = vadd.f32 %v809_v58, %v357_v2  ;;  %vm790_vm4 = vcmp.eq.f32.partialorder %v789_v61, 8.507059e+37 }
 0x4b9   :  { %v793_v25 = vsel %vm790_vm4, %v792_v14, %v788_v10 }
 0x4ba   :  { %v794_v33 = vmul.f32 %v1842_v53, %v793_v25 }
 0x515   :  { %v1181_v35 = vpop.xlane.xlu2 %1180 }
 0x516   :  { %1331 = vrcp.f32 %v1181_v35  ;;  %v1208_v54 = vand.u32 2147483648, %v1181_v35  ;;  %v1206_v15 = vand.u32 2147483647, %v1181_v35  ;;  %vm1202_vm11 = vweird.f32 %v1181_v35 }
 0x518   :  { %v1209_v59 = vor.u32 1.1754944e-38, %v1208_v54  ;;  %vm1207_vm1 = vcmp.eq.f32.partialorder %v1206_v15, 8.507059e+37 }
 0x51c   :  { %v1332_v42 = vpop.eup %1331 }
 0x51d   :  { %v1198_v46 = vmul.f32 %v1332_v42, %v1181_v35  ;;  %v1179_v48 = vpop.xlane.xlu0 %1178  ;;  %vm1203_vm8 = vweird.f32 %v1332_v42 }
 0x51e   :  { %1333 = vrcp.f32 %v1179_v48  ;;  %vm1204_vm13 = vmor %vm1202_vm11, %vm1203_vm8  ;;  %v1193_v17 = vand.u32 2147483648, %v1179_v48  ;;  %v1191_v12 = vand.u32 2147483647, %v1179_v48  ;;  %vm1187_vm6 = vweird.f32 %v1179_v48 }
 0x51f   :  { %v1199_v6 = vsub.f32 1.0, %v1198_v46 }
 0x520   :  { %v1194_v29 = vor.u32 1.1754944e-38, %v1193_v17  ;;  %vm1192_vm8 = vcmp.eq.f32.partialorder %v1191_v12, 8.507059e+37 }
 0x521   :  { %v1200_v55 = vmul.f32 %v1332_v42, %v1199_v6 }
 0x523   :  { %v1201_v18 = vadd.f32 %v1332_v42, %v1200_v55 }
 0x524   :  { %v1334_v60 = vpop.eup %1333 }
 0x525   :  { %v1205_v1 = vsel %vm1204_vm13, %v1332_v42, %v1201_v18  ;;  %v1183_v0 = vmul.f32 %v1334_v60, %v1179_v48  ;;  %vm1188_vm5 = vweird.f32 %v1334_v60 }
 0x526   :  { %v1210_v20 = vsel %vm1207_vm1, %v1209_v59, %v1205_v1  ;;  %vm1189_vm7 = vmor %vm1187_vm6, %vm1188_vm5 }
 0x527   :  { %v1211_v9 = vmul.f32 %v1861_v7, %v1210_v20  ;;  %v1184_v11 = vsub.f32 1.0, %v1183_v0  ;;  %v342_v7 = vmul.f32 %v1858_v62, %v341_v27 }
 0x529   :  { %v1213_v21 = vadd.f32 %v1211_v9, %v811_v8  ;;  %v1185_v22 = vmul.f32 %v1334_v60, %v1184_v11  ;;  %v810_v35 = vadd.f32 %v794_v33, %v342_v7 }
 0x52b   :  { %1232 = vmatpush.msrb.mxu2 %v1213_v21  ;;  %v1186_v26 = vadd.f32 %v1334_v60, %v1185_v22 }
 0x52d   :  { %v1190_v30 = vsel %vm1189_vm7, %v1334_v60, %v1186_v26 }
 0x52e   :  { %v1195_v34 = vsel %vm1192_vm8, %v1194_v29, %v1190_v30 }
 0x52f   :  { %v1196_v28 = vmul.f32 %v1864_v24, %v1195_v34 }
 0x531   :  { %v1212_v36 = vadd.f32 %v1196_v28, %v810_v35 }
 0x533   :  { %1233 = vmatpush.msrb.mxu2 %v1212_v36 }
 0x534   :  { %1267 = vmatmul.msk.f32.vlgmr.msrb.gmra.mxu2 %vm362_vm0, %v1214_v5 }
 0x5b7   :  { %v1235_v53 = vpop.f32.mrf.mxu2 }
 0x5b8   :  { %1238 = vst [vmem:[#allocation17] sm:$0x3] %v1235_v53 }
 0x5b9   :  { %1249 = dma.vmem_to_hbm [thread:$0]  %s1245_s1, 32, %s1247_s0, [#allocation4]  }
 0x5ba   :  { %1585 = dma.done.wait [#allocation4], 32  }
 0x5bb   :  { %1586 = vsyncadd [#allocation4], 4294967264 }
 0x5bc   :  { %1254 = vsyncpa [#allocation3], 1 }
 0x5bd   :  { %1255 = vsyncpa [#allocation6], 1 }
 0x5be   :  { %1256 = vsyncpa [#allocation9], 1 }
 0x5bf   :  { %1257 = vsyncpa [#allocation12], 1 }
 0x5c0   :  { %1258 = vsyncpa [#allocation15], 1 }
 0x5c1   :  { %1259 = vsyncpa [#allocation4], 1 }

</bundles_post_ra>
